<compile_context>
chip_gen: v5e
topology: v5e:2x2
jax: 0.10.0
libtpu: 0.0.40
codegen_flags: <defaults>
</compile_context>

<pallas_src>
import functools

import jax
import jax.numpy as jnp
from jax.experimental import pallas as pl
from jax.experimental.pallas import tpu as pltpu


def _softplus(v):
    # matches torch.nn.functional.softplus (beta=1, threshold=20)
    return jnp.where(v > 20.0, v, jnp.log(1.0 + jnp.exp(jnp.minimum(v, 20.0))))


def vf_kernel(x_ref, w12_ref, w3_ref, p_ref, ind_lhs_ref, ind_rhs_ref, o_ref,
              *, H, W):
    f32 = jnp.float32
    x = x_ref[...]                       # (C_pad, L), L = N*H*W
    C, L = x.shape
    HW = H * W
    inv_hw = 1.0 / float(HW)

    g1 = p_ref[0]                        # (C_pad, 1) norm1 gamma
    b1 = p_ref[1]                        # (C_pad, 1) norm1 beta
    b3 = p_ref[2]                        # (C_pad, 1) conv3 bias (norm2 affine folded in)
    ind_lhs = ind_lhs_ref[...]           # (L, NB_pad) 0/1 image-segment indicator
    ind_rhs = ind_rhs_ref[...]           # (NB_pad, L) its transpose

    # ---- boundary masks: 4 base masks, shared by conv1 and conv2 -------------
    k = jax.lax.broadcasted_iota(jnp.int32, (C, L), 1)
    m = (k & (HW - 1)) if (HW & (HW - 1)) == 0 else (k % HW)   # lane idx within image
    if (W & (W - 1)) == 0:                                      # power-of-two fast path
        row = m >> (W.bit_length() - 1)
        col = m & (W - 1)
    else:                                                       # generic fallback
        row = m // W
        col = m % W
    up_ok = row >= 1
    down_ok = row < (H - 1)
    left_ok = col >= 1
    right_ok = col < (W - 1)

    def tap_mask(di, dj):
        mk = None
        if di == -1:
            mk = up_ok
        elif di == 1:
            mk = down_ok
        if dj == -1:
            mk = left_ok if mk is None else (mk & left_ok)
        elif dj == 1:
            mk = right_ok if mk is None else (mk & right_ok)
        return mk

    # ---- per-image GroupNorm(C, C) == per-channel instance norm --------------
    def seg_norm(y, gamma=None, beta=None, eps=1e-5):
        # Segment sums and broadcast-back are MXU matmuls against the 0/1
        # indicators (padded indicator rows/cols are all zero -> inert), so
        # there is no per-image python loop, lane concat, or XLU reduce chain.
        y2 = jnp.concatenate([y, y * y], axis=0)                          # (2C, L)
        s = jnp.dot(y2, ind_lhs, preferred_element_type=f32) * inv_hw     # (2C, NB)
        mean = s[:C]
        var = s[C:] - mean * mean
        rstd = jax.lax.rsqrt(var + eps)
        stats = jnp.concatenate([mean * rstd, rstd], axis=0)              # (2C, NB)
        bb = jnp.dot(stats, ind_rhs, preferred_element_type=f32)          # (2C, L)
        out = y * bb[C:] - bb[:C]                                         # (y-mean)*rstd
        if gamma is not None:
            out = out * gamma + beta
        return out

    # ---- 3x3 "same" conv: 9 accumulated MXU matmuls, taps stay in vregs ------
    def conv3x3(y, ci):
        acc = jnp.dot(w12_ref[ci * 9 + 4], y, preferred_element_type=f32)  # center tap
        for a in range(3):
            for b in range(3):
                di, dj = a - 1, b - 1
                if di == 0 and dj == 0:
                    continue
                s_off = di * W + dj
                # shifted[l] = y[l + s_off]; wrap / cross-image positions masked to 0
                shifted = pltpu.roll(y, shift=(-s_off) % L, axis=1)
                tap = jnp.where(tap_mask(di, dj), shifted, 0.0)
                acc = acc + jnp.dot(w12_ref[ci * 9 + a * 3 + b], tap,
                                    preferred_element_type=f32)
        return acc

    h = seg_norm(x, g1, b1)                                   # norm1 (+affine)
    h = _softplus(conv3x3(h, 0))                              # conv1 + softplus
    h = _softplus(conv3x3(h, 1))                              # conv2 + softplus
    h = seg_norm(h)                                           # norm2 (affine folded into conv3)
    o_ref[...] = jnp.dot(w3_ref[...], h, preferred_element_type=f32) + b3   # conv3 (1x1)


def vf_forward(t, x, params):
    del t  # VF.forward ignores t for the math
    # TODO(synk): the PyTorch module's `self.nfe` counter is Python-side host
    # state, not part of the math, and is not reproduced here.
    N, C, H, W = x.shape
    HW = H * W
    L = N * HW
    f32 = jnp.float32
    C_pad = max(8, ((C + 7) // 8) * 8)          # channels -> full sublane tile
    NB_pad = max(8, ((N + 7) // 8) * 8)         # indicator columns -> sublane tile

    def pad_c(a, axis):
        pads = [(0, 0)] * a.ndim
        pads[axis] = (0, C_pad - C)
        return jnp.pad(a, pads)

    # ---- input: (N, C, H, W) -> (C_pad, N*H*W)  (lane-dense, batch on lanes) -
    x_p = pad_c(x.astype(f32), 1).transpose(1, 0, 2, 3).reshape(C_pad, L)

    # ---- conv1/conv2: (C, C, 3, 3) -> per-tap (C_pad, C_pad) matrices --------
    def prep3x3(w):
        w = pad_c(pad_c(w.astype(f32), 0), 1)                    # (C_pad, C_pad, 3, 3)
        return w.transpose(2, 3, 0, 1).reshape(9, C_pad, C_pad)  # [a*3+b, o, i]

    w12 = jnp.concatenate([prep3x3(params["w1"]), prep3x3(params["w2"])], axis=0)

    # ---- fold norm2's affine into the 1x1 conv -------------------------------
    g2 = pad_c(params["g2"].astype(f32), 0)
    b2 = pad_c(params["b2"].astype(f32), 0)
    b3 = pad_c(params["b3"].astype(f32), 0)
    w3 = pad_c(pad_c(params["w3"].astype(f32).reshape(C, C), 0), 1)
    w3f = w3 * g2[None, :]                                       # scale input channels
    b3f = (w3 @ b2 + b3).reshape(C_pad, 1)

    g1 = pad_c(params["g1"].astype(f32), 0).reshape(C_pad, 1)
    b1 = pad_c(params["b1"].astype(f32), 0).reshape(C_pad, 1)
    p_small = jnp.stack([g1, b1, b3f], axis=0)                   # (3, C_pad, 1)

    # ---- 0/1 per-image segment indicators for the in-kernel norm -------------
    seg = jnp.arange(L, dtype=jnp.int32) // HW                   # image id per lane
    ind_rhs = (jnp.arange(NB_pad, dtype=jnp.int32)[:, None] == seg[None, :]).astype(f32)
    ind_lhs = ind_rhs.T                                          # (L, NB_pad)

    # Gridless call: the whole working set (< 1 MiB) lives in VMEM for one
    # invocation.  For much larger H*W, tile L with a grid; a 2-way core_map
    # batch split is the v7x (2-TensorCore) extension.
    vmem = pl.BlockSpec(memory_space=pltpu.MemorySpace.VMEM)
    kernel = functools.partial(vf_kernel, H=H, W=W)
    out = pl.pallas_call(
        kernel,
        out_shape=jax.ShapeDtypeStruct((C_pad, L), f32),
        in_specs=[vmem] * 6,
        out_specs=vmem,
    )(x_p, w12, w3f, p_small, ind_lhs, ind_rhs)

    # ---- back to NCHW, drop pad channels --------------------------------------
    out = out.reshape(C_pad, N, H, W).transpose(1, 0, 2, 3)
    return out[:, :C]


def ref_forward(x, p):
    # plain-JAX reference mirroring the PyTorch module (NCHW)
    def gn(y, g, b):
        mean = y.mean(axis=(2, 3), keepdims=True)
        var = ((y - mean) ** 2).mean(axis=(2, 3), keepdims=True)
        return ((y - mean) * jax.lax.rsqrt(var + 1e-5)
                * g[None, :, None, None] + b[None, :, None, None])

    def conv(y, w, pad):
        return jax.lax.conv_general_dilated(
            y, w, window_strides=(1, 1), padding=pad,
            dimension_numbers=("NCHW", "OIHW", "NCHW"),
            precision=jax.lax.Precision.HIGHEST)

    y = gn(x, p["g1"], p["b1"])
    y = conv(y, p["w1"], [(1, 1), (1, 1)])
    y = _softplus(y)
    y = conv(y, p["w2"], [(1, 1), (1, 1)])
    y = _softplus(y)
    y = gn(y, p["g2"], p["b2"])
    y = conv(y, p["w3"], [(0, 0), (0, 0)]) + p["b3"][None, :, None, None]
    return y


if __name__ == "__main__":
    N, C, H, W = 2, 4, 16, 16
    key = jax.random.PRNGKey(0)
    ks = jax.random.split(key, 9)

    params = {
        "g1": 1.0 + 0.1 * jax.random.normal(ks[0], (C,), jnp.float32),
        "b1": 0.1 * jax.random.normal(ks[1], (C,), jnp.float32),
        "w1": jax.random.normal(ks[2], (C, C, 3, 3), jnp.float32) / (C * 9) ** 0.5,
        "w2": jax.random.normal(ks[3], (C, C, 3, 3), jnp.float32) / (C * 9) ** 0.5,
        "g2": 1.0 + 0.1 * jax.random.normal(ks[4], (C,), jnp.float32),
        "b2": 0.1 * jax.random.normal(ks[5], (C,), jnp.float32),
        "w3": jax.random.normal(ks[6], (C, C, 1, 1), jnp.float32) / C ** 0.5,
        "b3": 0.1 * jax.random.normal(ks[7], (C,), jnp.float32),
    }
    x = jax.random.normal(ks[8], (N, C, H, W), jnp.float32)
    t = jnp.float32(0.0)

    y = vf_forward(t, x, params)
    y = jax.block_until_ready(y)

    y_ref = ref_forward(x, params)
    assert y.shape == (N, C, H, W)
    if not jnp.allclose(y, y_ref, atol=1e-4, rtol=1e-4):
        raise AssertionError("Pallas VF kernel mismatch vs JAX reference")

    print("KERNEL_OK")
</pallas_src>

<mosaic_0001>
module attributes {stable_mosaic.version = 11 : i64} {
  func.func @vf_kernel(%arg0: memref<8x512xf32, #tpu.memory_space<vmem>>, %arg1: memref<18x8x8xf32, #tpu.memory_space<vmem>>, %arg2: memref<8x8xf32, #tpu.memory_space<vmem>>, %arg3: memref<3x8x1xf32, #tpu.memory_space<vmem>>, %arg4: memref<512x8xf32, #tpu.memory_space<vmem>>, %arg5: memref<8x512xf32, #tpu.memory_space<vmem>>, %arg6: memref<8x512xf32, #tpu.memory_space<vmem>>) attributes {dimension_semantics = [], scalar_prefetch = 0 : i64, scratch_operands = 0 : i64, tpu.core_type = #tpu.core_type<tc>} {
    %c0 = arith.constant 0 : index
    %c0_0 = arith.constant 0 : index
    %0 = vector.load %arg0[%c0, %c0_0] : memref<8x512xf32, #tpu.memory_space<vmem>>, vector<8x512xf32>
    %c0_1 = arith.constant 0 : index
    %c0_2 = arith.constant 0 : index
    %c0_3 = arith.constant 0 : index
    %1 = vector.load %arg3[%c0_1, %c0_2, %c0_3] : memref<3x8x1xf32, #tpu.memory_space<vmem>>, vector<1x8x1xf32>
    %2 = vector.shape_cast %1 : vector<1x8x1xf32> to vector<8x1xf32>
    %c1 = arith.constant 1 : index
    %c0_4 = arith.constant 0 : index
    %c0_5 = arith.constant 0 : index
    %3 = vector.load %arg3[%c1, %c0_4, %c0_5] : memref<3x8x1xf32, #tpu.memory_space<vmem>>, vector<1x8x1xf32>
    %4 = vector.shape_cast %3 : vector<1x8x1xf32> to vector<8x1xf32>
    %c2 = arith.constant 2 : index
    %c0_6 = arith.constant 0 : index
    %c0_7 = arith.constant 0 : index
    %5 = vector.load %arg3[%c2, %c0_6, %c0_7] : memref<3x8x1xf32, #tpu.memory_space<vmem>>, vector<1x8x1xf32>
    %6 = vector.shape_cast %5 : vector<1x8x1xf32> to vector<8x1xf32>
    %c0_8 = arith.constant 0 : index
    %c0_9 = arith.constant 0 : index
    %7 = vector.load %arg4[%c0_8, %c0_9] : memref<512x8xf32, #tpu.memory_space<vmem>>, vector<512x8xf32>
    %c0_10 = arith.constant 0 : index
    %c0_11 = arith.constant 0 : index
    %8 = vector.load %arg5[%c0_10, %c0_11] : memref<8x512xf32, #tpu.memory_space<vmem>>, vector<8x512xf32>
    %9 = tpu.iota {dimensions = array<i32: 1>} : vector<8x512xi32>
    %c255_i32 = arith.constant 255 : i32
    %10 = vector.broadcast %c255_i32 : i32 to vector<8x512xi32>
    %11 = arith.andi %9, %10 : vector<8x512xi32>
    %c4_i32 = arith.constant 4 : i32
    %12 = vector.broadcast %c4_i32 : i32 to vector<8x512xi32>
    %13 = arith.shrsi %11, %12 : vector<8x512xi32>
    %c15_i32 = arith.constant 15 : i32
    %14 = vector.broadcast %c15_i32 : i32 to vector<8x512xi32>
    %15 = arith.andi %11, %14 : vector<8x512xi32>
    %c1_i32 = arith.constant 1 : i32
    %16 = vector.broadcast %c1_i32 : i32 to vector<8x512xi32>
    %17 = arith.cmpi sge, %13, %16 : vector<8x512xi32>
    %c15_i32_12 = arith.constant 15 : i32
    %18 = vector.broadcast %c15_i32_12 : i32 to vector<8x512xi32>
    %19 = arith.cmpi slt, %13, %18 : vector<8x512xi32>
    %c1_i32_13 = arith.constant 1 : i32
    %20 = vector.broadcast %c1_i32_13 : i32 to vector<8x512xi32>
    %21 = arith.cmpi sge, %15, %20 : vector<8x512xi32>
    %c15_i32_14 = arith.constant 15 : i32
    %22 = vector.broadcast %c15_i32_14 : i32 to vector<8x512xi32>
    %23 = arith.cmpi slt, %15, %22 : vector<8x512xi32>
    %24 = arith.mulf %0, %0 : vector<8x512xf32>
    %25 = tpu.concatenate %0, %24 in 0 : vector<8x512xf32>, vector<8x512xf32> -> vector<16x512xf32>
    %cst = arith.constant dense<0.000000e+00> : vector<16x8xf32>
    %26 = tpu.matmul %25, %7, %cst {dimension_numbers = #tpu.dot_dimension_numbers<[1], [0], [0], [1], [0, 0, 1, 1], [], []>} : vector<16x512xf32>, vector<512x8xf32>, vector<16x8xf32> -> vector<16x8xf32>
    %cst_15 = arith.constant 3.906250e-03 : f32
    %27 = vector.broadcast %cst_15 : f32 to vector<16x8xf32>
    %28 = arith.mulf %26, %27 : vector<16x8xf32>
    %29 = vector.extract_strided_slice %28 {offsets = [0, 0], sizes = [8, 8], strides = [1, 1]} : vector<16x8xf32> to vector<8x8xf32>
    %30 = vector.extract_strided_slice %28 {offsets = [8, 0], sizes = [8, 8], strides = [1, 1]} : vector<16x8xf32> to vector<8x8xf32>
    %31 = arith.mulf %29, %29 : vector<8x8xf32>
    %32 = arith.subf %30, %31 : vector<8x8xf32>
    %cst_16 = arith.constant 9.99999974E-6 : f32
    %33 = vector.broadcast %cst_16 : f32 to vector<8x8xf32>
    %34 = arith.addf %32, %33 : vector<8x8xf32>
    %35 = math.rsqrt %34 : vector<8x8xf32>
    %36 = arith.mulf %29, %35 : vector<8x8xf32>
    %37 = tpu.concatenate %36, %35 in 0 : vector<8x8xf32>, vector<8x8xf32> -> vector<16x8xf32>
    %cst_17 = arith.constant dense<0.000000e+00> : vector<16x512xf32>
    %38 = tpu.matmul %37, %8, %cst_17 {dimension_numbers = #tpu.dot_dimension_numbers<[1], [0], [0], [1], [0, 0, 1, 1], [], []>} : vector<16x8xf32>, vector<8x512xf32>, vector<16x512xf32> -> vector<16x512xf32>
    %39 = vector.extract_strided_slice %38 {offsets = [8, 0], sizes = [8, 512], strides = [1, 1]} : vector<16x512xf32> to vector<8x512xf32>
    %40 = arith.mulf %0, %39 : vector<8x512xf32>
    %41 = vector.extract_strided_slice %38 {offsets = [0, 0], sizes = [8, 512], strides = [1, 1]} : vector<16x512xf32> to vector<8x512xf32>
    %42 = arith.subf %40, %41 : vector<8x512xf32>
    %43 = vector.broadcast %2 : vector<8x1xf32> to vector<8x512xf32>
    %44 = arith.mulf %42, %43 : vector<8x512xf32>
    %45 = vector.broadcast %4 : vector<8x1xf32> to vector<8x512xf32>
    %46 = arith.addf %44, %45 : vector<8x512xf32>
    %c4 = arith.constant 4 : index
    %c0_18 = arith.constant 0 : index
    %c0_19 = arith.constant 0 : index
    %47 = vector.load %arg1[%c4, %c0_18, %c0_19] : memref<18x8x8xf32, #tpu.memory_space<vmem>>, vector<1x8x8xf32>
    %48 = vector.shape_cast %47 : vector<1x8x8xf32> to vector<8x8xf32>
    %cst_20 = arith.constant dense<0.000000e+00> : vector<8x512xf32>
    %49 = tpu.matmul %48, %46, %cst_20 {dimension_numbers = #tpu.dot_dimension_numbers<[1], [0], [0], [1], [0, 0, 1, 1], [], []>} : vector<8x8xf32>, vector<8x512xf32>, vector<8x512xf32> -> vector<8x512xf32>
    %c17_i32 = arith.constant 17 : i32
    %50 = tpu.dynamic_rotate %46 by %c17_i32 dim 1 : vector<8x512xf32>, i32 -> vector<8x512xf32>
    %51 = arith.andi %17, %21 : vector<8x512xi1>
    %cst_21 = arith.constant 0.000000e+00 : f32
    %52 = vector.broadcast %cst_21 : f32 to vector<8x512xf32>
    %53 = arith.select %51, %50, %52 : vector<8x512xi1>, vector<8x512xf32>
    %c0_22 = arith.constant 0 : index
    %c0_23 = arith.constant 0 : index
    %c0_24 = arith.constant 0 : index
    %54 = vector.load %arg1[%c0_22, %c0_23, %c0_24] : memref<18x8x8xf32, #tpu.memory_space<vmem>>, vector<1x8x8xf32>
    %55 = vector.shape_cast %54 : vector<1x8x8xf32> to vector<8x8xf32>
    %cst_25 = arith.constant dense<0.000000e+00> : vector<8x512xf32>
    %56 = tpu.matmul %55, %53, %cst_25 {dimension_numbers = #tpu.dot_dimension_numbers<[1], [0], [0], [1], [0, 0, 1, 1], [], []>} : vector<8x8xf32>, vector<8x512xf32>, vector<8x512xf32> -> vector<8x512xf32>
    %57 = arith.addf %49, %56 : vector<8x512xf32>
    %c16_i32 = arith.constant 16 : i32
    %58 = tpu.dynamic_rotate %46 by %c16_i32 dim 1 : vector<8x512xf32>, i32 -> vector<8x512xf32>
    %cst_26 = arith.constant 0.000000e+00 : f32
    %59 = vector.broadcast %cst_26 : f32 to vector<8x512xf32>
    %60 = arith.select %17, %58, %59 : vector<8x512xi1>, vector<8x512xf32>
    %c1_27 = arith.constant 1 : index
    %c0_28 = arith.constant 0 : index
    %c0_29 = arith.constant 0 : index
    %61 = vector.load %arg1[%c1_27, %c0_28, %c0_29] : memref<18x8x8xf32, #tpu.memory_space<vmem>>, vector<1x8x8xf32>
    %62 = vector.shape_cast %61 : vector<1x8x8xf32> to vector<8x8xf32>
    %cst_30 = arith.constant dense<0.000000e+00> : vector<8x512xf32>
    %63 = tpu.matmul %62, %60, %cst_30 {dimension_numbers = #tpu.dot_dimension_numbers<[1], [0], [0], [1], [0, 0, 1, 1], [], []>} : vector<8x8xf32>, vector<8x512xf32>, vector<8x512xf32> -> vector<8x512xf32>
    %64 = arith.addf %57, %63 : vector<8x512xf32>
    %c15_i32_31 = arith.constant 15 : i32
    %65 = tpu.dynamic_rotate %46 by %c15_i32_31 dim 1 : vector<8x512xf32>, i32 -> vector<8x512xf32>
    %66 = arith.andi %17, %23 : vector<8x512xi1>
    %cst_32 = arith.constant 0.000000e+00 : f32
    %67 = vector.broadcast %cst_32 : f32 to vector<8x512xf32>
    %68 = arith.select %66, %65, %67 : vector<8x512xi1>, vector<8x512xf32>
    %c2_33 = arith.constant 2 : index
    %c0_34 = arith.constant 0 : index
    %c0_35 = arith.constant 0 : index
    %69 = vector.load %arg1[%c2_33, %c0_34, %c0_35] : memref<18x8x8xf32, #tpu.memory_space<vmem>>, vector<1x8x8xf32>
    %70 = vector.shape_cast %69 : vector<1x8x8xf32> to vector<8x8xf32>
    %cst_36 = arith.constant dense<0.000000e+00> : vector<8x512xf32>
    %71 = tpu.matmul %70, %68, %cst_36 {dimension_numbers = #tpu.dot_dimension_numbers<[1], [0], [0], [1], [0, 0, 1, 1], [], []>} : vector<8x8xf32>, vector<8x512xf32>, vector<8x512xf32> -> vector<8x512xf32>
    %72 = arith.addf %64, %71 : vector<8x512xf32>
    %c1_i32_37 = arith.constant 1 : i32
    %73 = tpu.dynamic_rotate %46 by %c1_i32_37 dim 1 : vector<8x512xf32>, i32 -> vector<8x512xf32>
    %cst_38 = arith.constant 0.000000e+00 : f32
    %74 = vector.broadcast %cst_38 : f32 to vector<8x512xf32>
    %75 = arith.select %21, %73, %74 : vector<8x512xi1>, vector<8x512xf32>
    %c3 = arith.constant 3 : index
    %c0_39 = arith.constant 0 : index
    %c0_40 = arith.constant 0 : index
    %76 = vector.load %arg1[%c3, %c0_39, %c0_40] : memref<18x8x8xf32, #tpu.memory_space<vmem>>, vector<1x8x8xf32>
    %77 = vector.shape_cast %76 : vector<1x8x8xf32> to vector<8x8xf32>
    %cst_41 = arith.constant dense<0.000000e+00> : vector<8x512xf32>
    %78 = tpu.matmul %77, %75, %cst_41 {dimension_numbers = #tpu.dot_dimension_numbers<[1], [0], [0], [1], [0, 0, 1, 1], [], []>} : vector<8x8xf32>, vector<8x512xf32>, vector<8x512xf32> -> vector<8x512xf32>
    %79 = arith.addf %72, %78 : vector<8x512xf32>
    %c511_i32 = arith.constant 511 : i32
    %80 = tpu.dynamic_rotate %46 by %c511_i32 dim 1 : vector<8x512xf32>, i32 -> vector<8x512xf32>
    %cst_42 = arith.constant 0.000000e+00 : f32
    %81 = vector.broadcast %cst_42 : f32 to vector<8x512xf32>
    %82 = arith.select %23, %80, %81 : vector<8x512xi1>, vector<8x512xf32>
    %c5 = arith.constant 5 : index
    %c0_43 = arith.constant 0 : index
    %c0_44 = arith.constant 0 : index
    %83 = vector.load %arg1[%c5, %c0_43, %c0_44] : memref<18x8x8xf32, #tpu.memory_space<vmem>>, vector<1x8x8xf32>
    %84 = vector.shape_cast %83 : vector<1x8x8xf32> to vector<8x8xf32>
    %cst_45 = arith.constant dense<0.000000e+00> : vector<8x512xf32>
    %85 = tpu.matmul %84, %82, %cst_45 {dimension_numbers = #tpu.dot_dimension_numbers<[1], [0], [0], [1], [0, 0, 1, 1], [], []>} : vector<8x8xf32>, vector<8x512xf32>, vector<8x512xf32> -> vector<8x512xf32>
    %86 = arith.addf %79, %85 : vector<8x512xf32>
    %c497_i32 = arith.constant 497 : i32
    %87 = tpu.dynamic_rotate %46 by %c497_i32 dim 1 : vector<8x512xf32>, i32 -> vector<8x512xf32>
    %88 = arith.andi %19, %21 : vector<8x512xi1>
    %cst_46 = arith.constant 0.000000e+00 : f32
    %89 = vector.broadcast %cst_46 : f32 to vector<8x512xf32>
    %90 = arith.select %88, %87, %89 : vector<8x512xi1>, vector<8x512xf32>
    %c6 = arith.constant 6 : index
    %c0_47 = arith.constant 0 : index
    %c0_48 = arith.constant 0 : index
    %91 = vector.load %arg1[%c6, %c0_47, %c0_48] : memref<18x8x8xf32, #tpu.memory_space<vmem>>, vector<1x8x8xf32>
    %92 = vector.shape_cast %91 : vector<1x8x8xf32> to vector<8x8xf32>
    %cst_49 = arith.constant dense<0.000000e+00> : vector<8x512xf32>
    %93 = tpu.matmul %92, %90, %cst_49 {dimension_numbers = #tpu.dot_dimension_numbers<[1], [0], [0], [1], [0, 0, 1, 1], [], []>} : vector<8x8xf32>, vector<8x512xf32>, vector<8x512xf32> -> vector<8x512xf32>
    %94 = arith.addf %86, %93 : vector<8x512xf32>
    %c496_i32 = arith.constant 496 : i32
    %95 = tpu.dynamic_rotate %46 by %c496_i32 dim 1 : vector<8x512xf32>, i32 -> vector<8x512xf32>
    %cst_50 = arith.constant 0.000000e+00 : f32
    %96 = vector.broadcast %cst_50 : f32 to vector<8x512xf32>
    %97 = arith.select %19, %95, %96 : vector<8x512xi1>, vector<8x512xf32>
    %c7 = arith.constant 7 : index
    %c0_51 = arith.constant 0 : index
    %c0_52 = arith.constant 0 : index
    %98 = vector.load %arg1[%c7, %c0_51, %c0_52] : memref<18x8x8xf32, #tpu.memory_space<vmem>>, vector<1x8x8xf32>
    %99 = vector.shape_cast %98 : vector<1x8x8xf32> to vector<8x8xf32>
    %cst_53 = arith.constant dense<0.000000e+00> : vector<8x512xf32>
    %100 = tpu.matmul %99, %97, %cst_53 {dimension_numbers = #tpu.dot_dimension_numbers<[1], [0], [0], [1], [0, 0, 1, 1], [], []>} : vector<8x8xf32>, vector<8x512xf32>, vector<8x512xf32> -> vector<8x512xf32>
    %101 = arith.addf %94, %100 : vector<8x512xf32>
    %c495_i32 = arith.constant 495 : i32
    %102 = tpu.dynamic_rotate %46 by %c495_i32 dim 1 : vector<8x512xf32>, i32 -> vector<8x512xf32>
    %103 = arith.andi %19, %23 : vector<8x512xi1>
    %cst_54 = arith.constant 0.000000e+00 : f32
    %104 = vector.broadcast %cst_54 : f32 to vector<8x512xf32>
    %105 = arith.select %103, %102, %104 : vector<8x512xi1>, vector<8x512xf32>
    %c8 = arith.constant 8 : index
    %c0_55 = arith.constant 0 : index
    %c0_56 = arith.constant 0 : index
    %106 = vector.load %arg1[%c8, %c0_55, %c0_56] : memref<18x8x8xf32, #tpu.memory_space<vmem>>, vector<1x8x8xf32>
    %107 = vector.shape_cast %106 : vector<1x8x8xf32> to vector<8x8xf32>
    %cst_57 = arith.constant dense<0.000000e+00> : vector<8x512xf32>
    %108 = tpu.matmul %107, %105, %cst_57 {dimension_numbers = #tpu.dot_dimension_numbers<[1], [0], [0], [1], [0, 0, 1, 1], [], []>} : vector<8x8xf32>, vector<8x512xf32>, vector<8x512xf32> -> vector<8x512xf32>
    %109 = arith.addf %101, %108 : vector<8x512xf32>
    %cst_58 = arith.constant 2.000000e+01 : f32
    %110 = vector.broadcast %cst_58 : f32 to vector<8x512xf32>
    %111 = arith.cmpf ogt, %109, %110 : vector<8x512xf32>
    %cst_59 = arith.constant 2.000000e+01 : f32
    %112 = vector.broadcast %cst_59 : f32 to vector<8x512xf32>
    %113 = arith.minimumf %109, %112 : vector<8x512xf32>
    %114 = math.exp %113 : vector<8x512xf32>
    %cst_60 = arith.constant 1.000000e+00 : f32
    %115 = vector.broadcast %cst_60 : f32 to vector<8x512xf32>
    %116 = arith.addf %115, %114 : vector<8x512xf32>
    %117 = math.log %116 : vector<8x512xf32>
    %118 = arith.select %111, %109, %117 : vector<8x512xi1>, vector<8x512xf32>
    %c13 = arith.constant 13 : index
    %c0_61 = arith.constant 0 : index
    %c0_62 = arith.constant 0 : index
    %119 = vector.load %arg1[%c13, %c0_61, %c0_62] : memref<18x8x8xf32, #tpu.memory_space<vmem>>, vector<1x8x8xf32>
    %120 = vector.shape_cast %119 : vector<1x8x8xf32> to vector<8x8xf32>
    %cst_63 = arith.constant dense<0.000000e+00> : vector<8x512xf32>
    %121 = tpu.matmul %120, %118, %cst_63 {dimension_numbers = #tpu.dot_dimension_numbers<[1], [0], [0], [1], [0, 0, 1, 1], [], []>} : vector<8x8xf32>, vector<8x512xf32>, vector<8x512xf32> -> vector<8x512xf32>
    %c17_i32_64 = arith.constant 17 : i32
    %122 = tpu.dynamic_rotate %118 by %c17_i32_64 dim 1 : vector<8x512xf32>, i32 -> vector<8x512xf32>
    %123 = arith.andi %17, %21 : vector<8x512xi1>
    %cst_65 = arith.constant 0.000000e+00 : f32
    %124 = vector.broadcast %cst_65 : f32 to vector<8x512xf32>
    %125 = arith.select %123, %122, %124 : vector<8x512xi1>, vector<8x512xf32>
    %c9 = arith.constant 9 : index
    %c0_66 = arith.constant 0 : index
    %c0_67 = arith.constant 0 : index
    %126 = vector.load %arg1[%c9, %c0_66, %c0_67] : memref<18x8x8xf32, #tpu.memory_space<vmem>>, vector<1x8x8xf32>
    %127 = vector.shape_cast %126 : vector<1x8x8xf32> to vector<8x8xf32>
    %cst_68 = arith.constant dense<0.000000e+00> : vector<8x512xf32>
    %128 = tpu.matmul %127, %125, %cst_68 {dimension_numbers = #tpu.dot_dimension_numbers<[1], [0], [0], [1], [0, 0, 1, 1], [], []>} : vector<8x8xf32>, vector<8x512xf32>, vector<8x512xf32> -> vector<8x512xf32>
    %129 = arith.addf %121, %128 : vector<8x512xf32>
    %c16_i32_69 = arith.constant 16 : i32
    %130 = tpu.dynamic_rotate %118 by %c16_i32_69 dim 1 : vector<8x512xf32>, i32 -> vector<8x512xf32>
    %cst_70 = arith.constant 0.000000e+00 : f32
    %131 = vector.broadcast %cst_70 : f32 to vector<8x512xf32>
    %132 = arith.select %17, %130, %131 : vector<8x512xi1>, vector<8x512xf32>
    %c10 = arith.constant 10 : index
    %c0_71 = arith.constant 0 : index
    %c0_72 = arith.constant 0 : index
    %133 = vector.load %arg1[%c10, %c0_71, %c0_72] : memref<18x8x8xf32, #tpu.memory_space<vmem>>, vector<1x8x8xf32>
    %134 = vector.shape_cast %133 : vector<1x8x8xf32> to vector<8x8xf32>
    %cst_73 = arith.constant dense<0.000000e+00> : vector<8x512xf32>
    %135 = tpu.matmul %134, %132, %cst_73 {dimension_numbers = #tpu.dot_dimension_numbers<[1], [0], [0], [1], [0, 0, 1, 1], [], []>} : vector<8x8xf32>, vector<8x512xf32>, vector<8x512xf32> -> vector<8x512xf32>
    %136 = arith.addf %129, %135 : vector<8x512xf32>
    %c15_i32_74 = arith.constant 15 : i32
    %137 = tpu.dynamic_rotate %118 by %c15_i32_74 dim 1 : vector<8x512xf32>, i32 -> vector<8x512xf32>
    %138 = arith.andi %17, %23 : vector<8x512xi1>
    %cst_75 = arith.constant 0.000000e+00 : f32
    %139 = vector.broadcast %cst_75 : f32 to vector<8x512xf32>
    %140 = arith.select %138, %137, %139 : vector<8x512xi1>, vector<8x512xf32>
    %c11 = arith.constant 11 : index
    %c0_76 = arith.constant 0 : index
    %c0_77 = arith.constant 0 : index
    %141 = vector.load %arg1[%c11, %c0_76, %c0_77] : memref<18x8x8xf32, #tpu.memory_space<vmem>>, vector<1x8x8xf32>
    %142 = vector.shape_cast %141 : vector<1x8x8xf32> to vector<8x8xf32>
    %cst_78 = arith.constant dense<0.000000e+00> : vector<8x512xf32>
    %143 = tpu.matmul %142, %140, %cst_78 {dimension_numbers = #tpu.dot_dimension_numbers<[1], [0], [0], [1], [0, 0, 1, 1], [], []>} : vector<8x8xf32>, vector<8x512xf32>, vector<8x512xf32> -> vector<8x512xf32>
    %144 = arith.addf %136, %143 : vector<8x512xf32>
    %c1_i32_79 = arith.constant 1 : i32
    %145 = tpu.dynamic_rotate %118 by %c1_i32_79 dim 1 : vector<8x512xf32>, i32 -> vector<8x512xf32>
    %cst_80 = arith.constant 0.000000e+00 : f32
    %146 = vector.broadcast %cst_80 : f32 to vector<8x512xf32>
    %147 = arith.select %21, %145, %146 : vector<8x512xi1>, vector<8x512xf32>
    %c12 = arith.constant 12 : index
    %c0_81 = arith.constant 0 : index
    %c0_82 = arith.constant 0 : index
    %148 = vector.load %arg1[%c12, %c0_81, %c0_82] : memref<18x8x8xf32, #tpu.memory_space<vmem>>, vector<1x8x8xf32>
    %149 = vector.shape_cast %148 : vector<1x8x8xf32> to vector<8x8xf32>
    %cst_83 = arith.constant dense<0.000000e+00> : vector<8x512xf32>
    %150 = tpu.matmul %149, %147, %cst_83 {dimension_numbers = #tpu.dot_dimension_numbers<[1], [0], [0], [1], [0, 0, 1, 1], [], []>} : vector<8x8xf32>, vector<8x512xf32>, vector<8x512xf32> -> vector<8x512xf32>
    %151 = arith.addf %144, %150 : vector<8x512xf32>
    %c511_i32_84 = arith.constant 511 : i32
    %152 = tpu.dynamic_rotate %118 by %c511_i32_84 dim 1 : vector<8x512xf32>, i32 -> vector<8x512xf32>
    %cst_85 = arith.constant 0.000000e+00 : f32
    %153 = vector.broadcast %cst_85 : f32 to vector<8x512xf32>
    %154 = arith.select %23, %152, %153 : vector<8x512xi1>, vector<8x512xf32>
    %c14 = arith.constant 14 : index
    %c0_86 = arith.constant 0 : index
    %c0_87 = arith.constant 0 : index
    %155 = vector.load %arg1[%c14, %c0_86, %c0_87] : memref<18x8x8xf32, #tpu.memory_space<vmem>>, vector<1x8x8xf32>
    %156 = vector.shape_cast %155 : vector<1x8x8xf32> to vector<8x8xf32>
    %cst_88 = arith.constant dense<0.000000e+00> : vector<8x512xf32>
    %157 = tpu.matmul %156, %154, %cst_88 {dimension_numbers = #tpu.dot_dimension_numbers<[1], [0], [0], [1], [0, 0, 1, 1], [], []>} : vector<8x8xf32>, vector<8x512xf32>, vector<8x512xf32> -> vector<8x512xf32>
    %158 = arith.addf %151, %157 : vector<8x512xf32>
    %c497_i32_89 = arith.constant 497 : i32
    %159 = tpu.dynamic_rotate %118 by %c497_i32_89 dim 1 : vector<8x512xf32>, i32 -> vector<8x512xf32>
    %160 = arith.andi %19, %21 : vector<8x512xi1>
    %cst_90 = arith.constant 0.000000e+00 : f32
    %161 = vector.broadcast %cst_90 : f32 to vector<8x512xf32>
    %162 = arith.select %160, %159, %161 : vector<8x512xi1>, vector<8x512xf32>
    %c15 = arith.constant 15 : index
    %c0_91 = arith.constant 0 : index
    %c0_92 = arith.constant 0 : index
    %163 = vector.load %arg1[%c15, %c0_91, %c0_92] : memref<18x8x8xf32, #tpu.memory_space<vmem>>, vector<1x8x8xf32>
    %164 = vector.shape_cast %163 : vector<1x8x8xf32> to vector<8x8xf32>
    %cst_93 = arith.constant dense<0.000000e+00> : vector<8x512xf32>
    %165 = tpu.matmul %164, %162, %cst_93 {dimension_numbers = #tpu.dot_dimension_numbers<[1], [0], [0], [1], [0, 0, 1, 1], [], []>} : vector<8x8xf32>, vector<8x512xf32>, vector<8x512xf32> -> vector<8x512xf32>
    %166 = arith.addf %158, %165 : vector<8x512xf32>
    %c496_i32_94 = arith.constant 496 : i32
    %167 = tpu.dynamic_rotate %118 by %c496_i32_94 dim 1 : vector<8x512xf32>, i32 -> vector<8x512xf32>
    %cst_95 = arith.constant 0.000000e+00 : f32
    %168 = vector.broadcast %cst_95 : f32 to vector<8x512xf32>
    %169 = arith.select %19, %167, %168 : vector<8x512xi1>, vector<8x512xf32>
    %c16 = arith.constant 16 : index
    %c0_96 = arith.constant 0 : index
    %c0_97 = arith.constant 0 : index
    %170 = vector.load %arg1[%c16, %c0_96, %c0_97] : memref<18x8x8xf32, #tpu.memory_space<vmem>>, vector<1x8x8xf32>
    %171 = vector.shape_cast %170 : vector<1x8x8xf32> to vector<8x8xf32>
    %cst_98 = arith.constant dense<0.000000e+00> : vector<8x512xf32>
    %172 = tpu.matmul %171, %169, %cst_98 {dimension_numbers = #tpu.dot_dimension_numbers<[1], [0], [0], [1], [0, 0, 1, 1], [], []>} : vector<8x8xf32>, vector<8x512xf32>, vector<8x512xf32> -> vector<8x512xf32>
    %173 = arith.addf %166, %172 : vector<8x512xf32>
    %c495_i32_99 = arith.constant 495 : i32
    %174 = tpu.dynamic_rotate %118 by %c495_i32_99 dim 1 : vector<8x512xf32>, i32 -> vector<8x512xf32>
    %175 = arith.andi %19, %23 : vector<8x512xi1>
    %cst_100 = arith.constant 0.000000e+00 : f32
    %176 = vector.broadcast %cst_100 : f32 to vector<8x512xf32>
    %177 = arith.select %175, %174, %176 : vector<8x512xi1>, vector<8x512xf32>
    %c17 = arith.constant 17 : index
    %c0_101 = arith.constant 0 : index
    %c0_102 = arith.constant 0 : index
    %178 = vector.load %arg1[%c17, %c0_101, %c0_102] : memref<18x8x8xf32, #tpu.memory_space<vmem>>, vector<1x8x8xf32>
    %179 = vector.shape_cast %178 : vector<1x8x8xf32> to vector<8x8xf32>
    %cst_103 = arith.constant dense<0.000000e+00> : vector<8x512xf32>
    %180 = tpu.matmul %179, %177, %cst_103 {dimension_numbers = #tpu.dot_dimension_numbers<[1], [0], [0], [1], [0, 0, 1, 1], [], []>} : vector<8x8xf32>, vector<8x512xf32>, vector<8x512xf32> -> vector<8x512xf32>
    %181 = arith.addf %173, %180 : vector<8x512xf32>
    %cst_104 = arith.constant 2.000000e+01 : f32
    %182 = vector.broadcast %cst_104 : f32 to vector<8x512xf32>
    %183 = arith.cmpf ogt, %181, %182 : vector<8x512xf32>
    %cst_105 = arith.constant 2.000000e+01 : f32
    %184 = vector.broadcast %cst_105 : f32 to vector<8x512xf32>
    %185 = arith.minimumf %181, %184 : vector<8x512xf32>
    %186 = math.exp %185 : vector<8x512xf32>
    %cst_106 = arith.constant 1.000000e+00 : f32
    %187 = vector.broadcast %cst_106 : f32 to vector<8x512xf32>
    %188 = arith.addf %187, %186 : vector<8x512xf32>
    %189 = math.log %188 : vector<8x512xf32>
    %190 = arith.select %183, %181, %189 : vector<8x512xi1>, vector<8x512xf32>
    %191 = arith.mulf %190, %190 : vector<8x512xf32>
    %192 = tpu.concatenate %190, %191 in 0 : vector<8x512xf32>, vector<8x512xf32> -> vector<16x512xf32>
    %cst_107 = arith.constant dense<0.000000e+00> : vector<16x8xf32>
    %193 = tpu.matmul %192, %7, %cst_107 {dimension_numbers = #tpu.dot_dimension_numbers<[1], [0], [0], [1], [0, 0, 1, 1], [], []>} : vector<16x512xf32>, vector<512x8xf32>, vector<16x8xf32> -> vector<16x8xf32>
    %cst_108 = arith.constant 3.906250e-03 : f32
    %194 = vector.broadcast %cst_108 : f32 to vector<16x8xf32>
    %195 = arith.mulf %193, %194 : vector<16x8xf32>
    %196 = vector.extract_strided_slice %195 {offsets = [0, 0], sizes = [8, 8], strides = [1, 1]} : vector<16x8xf32> to vector<8x8xf32>
    %197 = vector.extract_strided_slice %195 {offsets = [8, 0], sizes = [8, 8], strides = [1, 1]} : vector<16x8xf32> to vector<8x8xf32>
    %198 = arith.mulf %196, %196 : vector<8x8xf32>
    %199 = arith.subf %197, %198 : vector<8x8xf32>
    %cst_109 = arith.constant 9.99999974E-6 : f32
    %200 = vector.broadcast %cst_109 : f32 to vector<8x8xf32>
    %201 = arith.addf %199, %200 : vector<8x8xf32>
    %202 = math.rsqrt %201 : vector<8x8xf32>
    %203 = arith.mulf %196, %202 : vector<8x8xf32>
    %204 = tpu.concatenate %203, %202 in 0 : vector<8x8xf32>, vector<8x8xf32> -> vector<16x8xf32>
    %cst_110 = arith.constant dense<0.000000e+00> : vector<16x512xf32>
    %205 = tpu.matmul %204, %8, %cst_110 {dimension_numbers = #tpu.dot_dimension_numbers<[1], [0], [0], [1], [0, 0, 1, 1], [], []>} : vector<16x8xf32>, vector<8x512xf32>, vector<16x512xf32> -> vector<16x512xf32>
    %206 = vector.extract_strided_slice %205 {offsets = [8, 0], sizes = [8, 512], strides = [1, 1]} : vector<16x512xf32> to vector<8x512xf32>
    %207 = arith.mulf %190, %206 : vector<8x512xf32>
    %208 = vector.extract_strided_slice %205 {offsets = [0, 0], sizes = [8, 512], strides = [1, 1]} : vector<16x512xf32> to vector<8x512xf32>
    %209 = arith.subf %207, %208 : vector<8x512xf32>
    %c0_111 = arith.constant 0 : index
    %c0_112 = arith.constant 0 : index
    %210 = vector.load %arg2[%c0_111, %c0_112] : memref<8x8xf32, #tpu.memory_space<vmem>>, vector<8x8xf32>
    %cst_113 = arith.constant dense<0.000000e+00> : vector<8x512xf32>
    %211 = tpu.matmul %210, %209, %cst_113 {dimension_numbers = #tpu.dot_dimension_numbers<[1], [0], [0], [1], [0, 0, 1, 1], [], []>} : vector<8x8xf32>, vector<8x512xf32>, vector<8x512xf32> -> vector<8x512xf32>
    %212 = vector.broadcast %6 : vector<8x1xf32> to vector<8x512xf32>
    %213 = arith.addf %211, %212 : vector<8x512xf32>
    %c0_114 = arith.constant 0 : index
    %c0_115 = arith.constant 0 : index
    %214 = vector.load %arg6[%c0_114, %c0_115] : memref<8x512xf32, #tpu.memory_space<vmem>>, vector<8x512xf32>
    tpu.vector_store %arg6[%c0_114, %c0_115], %213 {strides = array<i32>} : memref<8x512xf32, #tpu.memory_space<vmem>>, vector<8x512xf32>,
    return
  }
}

</mosaic_0001>

<bundles_post_ra>
// kernel: tpu_custom_call.1
= control target key start
LH: loop header
LB: loop body
LE: loop exit
PB: predicated region body
PF: predicated region fallthrough
CT: control target
= control target key end

     0   :  { %s4178_s0 = inlined_call_operand.vmem [shape: f32[8,512], index: 0, kind: input, shape index: {}]   ;;  %s4179_s1 = inlined_call_operand.vmem [shape: f32[18,8,8], index: 1, kind: input, shape index: {}]   ;;  %s4180_s2 = inlined_call_operand.vmem [shape: f32[8,8], index: 2, kind: input, shape index: {}]   ;;  %s4181_s3 = inlined_call_operand.vmem [shape: f32[3,8,1], index: 3, kind: input, shape index: {}]   ;;  %s4182_s4 = inlined_call_operand.vmem [shape: f32[512,8], index: 4, kind: input, shape index: {}]   ;;  %s4183_s5 = inlined_call_operand.vmem [shape: f32[8,512], index: 5, kind: input, shape index: {}]   ;;  %s4184_s6 = inlined_call_operand.hbm [shape: f32[8,512], index: 6, kind: output, shape index: {}]  }
   0x1   :  { %v80_v0 = vld [vmem:[%s4182_s4 + $0x178] sm:$0xff]  ;;  %v79_v1 = vld [vmem:[%s4182_s4 + $0x170] sm:$0xff]  ;;  %v78_v5 = vld [vmem:[%s4182_s4 + $0x168] sm:$0xff] }
   0x2   :  { %v96_v2 = vld [vmem:[%s4182_s4 + $0x1f8] sm:$0xff]  ;;  %184 = vmatpush.msra.mxu2 %v80_v0  ;;  %v95_v6 = vld [vmem:[%s4182_s4 + $0x1f0] sm:$0xff]  ;;  %v94_v9 = vld [vmem:[%s4182_s4 + $0x1e8] sm:$0xff] }
   0x3   :  { %207 = vmatpush.msra.mxu3 %v96_v2  ;;  %v48_v3 = vld [vmem:[%s4182_s4 + $0x78] sm:$0xff]  ;;  %v47_v7 = vld [vmem:[%s4182_s4 + $0x70] sm:$0xff]  ;;  %v46_v10 = vld [vmem:[%s4182_s4 + $0x68] sm:$0xff] }
   0x4   :  { %v64_v4 = vld [vmem:[%s4182_s4 + $0xf8] sm:$0xff]  ;;  %138 = vmatpush.msra.mxu0 %v48_v3  ;;  %v63_v8 = vld [vmem:[%s4182_s4 + $0xf0] sm:$0xff]  ;;  %185 = vmatpush.msra.mxu2 %v79_v1  ;;  %v77_v11 = vld [vmem:[%s4182_s4 + $0x160] sm:$0xff] }
   0x5   :  { %161 = vmatpush.msra.mxu1 %v64_v4  ;;  %208 = vmatpush.msra.mxu3 %v95_v6  ;;  %v62_v12 = vld [vmem:[%s4182_s4 + $0xe8] sm:$0xff]  ;;  %v93_v13 = vld [vmem:[%s4182_s4 + $0x1e0] sm:$0xff]  ;;  %v76_v16 = vld [vmem:[%s4182_s4 + $0x158] sm:$0xff] }
   0x6   :  { %139 = vmatpush.msra.mxu0 %v47_v7  ;;  %186 = vmatpush.msra.mxu2 %v78_v5  ;;  %v45_v14 = vld [vmem:[%s4182_s4 + $0x60] sm:$0xff]  ;;  %v92_v17 = vld [vmem:[%s4182_s4 + $0x1d8] sm:$0xff]  ;;  %v75_v20 = vld [vmem:[%s4182_s4 + $0x150] sm:$0xff] }
   0x7   :  { %162 = vmatpush.msra.mxu1 %v63_v8  ;;  %209 = vmatpush.msra.mxu3 %v94_v9  ;;  %v61_v15 = vld [vmem:[%s4182_s4 + $0xe0] sm:$0xff]  ;;  %v44_v18 = vld [vmem:[%s4182_s4 + $0x58] sm:$0xff]  ;;  %v91_v21 = vld [vmem:[%s4182_s4 + $0x1d0] sm:$0xff] }
   0x8   :  { %140 = vmatpush.msra.mxu0 %v46_v10  ;;  %187 = vmatpush.msra.mxu2 %v77_v11  ;;  %v60_v19 = vld [vmem:[%s4182_s4 + $0xd8] sm:$0xff]  ;;  %v43_v22 = vld [vmem:[%s4182_s4 + $0x50] sm:$0xff]  ;;  %v74_v24 = vld [vmem:[%s4182_s4 + $0x148] sm:$0xff] }
   0x9   :  { %163 = vmatpush.msra.mxu1 %v62_v12  ;;  %210 = vmatpush.msra.mxu3 %v93_v13  ;;  %v59_v23 = vld [vmem:[%s4182_s4 + $0xd0] sm:$0xff]  ;;  %v90_v25 = vld [vmem:[%s4182_s4 + $0x1c8] sm:$0xff]  ;;  %v73_v28 = vld [vmem:[%s4182_s4 + $0x140] sm:$0xff] }
   0xa   :  { %141 = vmatpush.msra.mxu0 %v45_v14  ;;  %188 = vmatpush.msra.mxu2 %v76_v16  ;;  %v42_v26 = vld [vmem:[%s4182_s4 + $0x48] sm:$0xff]  ;;  %v89_v29 = vld [vmem:[%s4182_s4 + $0x1c0] sm:$0xff]  ;;  %v72_v32 = vld [vmem:[%s4182_s4 + $0x138] sm:$0xff] }
   0xb   :  { %164 = vmatpush.msra.mxu1 %v61_v15  ;;  %211 = vmatpush.msra.mxu3 %v92_v17  ;;  %v58_v27 = vld [vmem:[%s4182_s4 + $0xc8] sm:$0xff]  ;;  %v41_v30 = vld [vmem:[%s4182_s4 + $0x40] sm:$0xff]  ;;  %v88_v33 = vld [vmem:[%s4182_s4 + $0x1b8] sm:$0xff] }
   0xc   :  { %142 = vmatpush.msra.mxu0 %v44_v18  ;;  %189 = vmatpush.msra.mxu2 %v75_v20  ;;  %v57_v31 = vld [vmem:[%s4182_s4 + $0xc0] sm:$0xff]  ;;  %v40_v34 = vld [vmem:[%s4182_s4 + $0x38] sm:$0xff]  ;;  %v71_v36 = vld [vmem:[%s4182_s4 + $0x130] sm:$0xff] }
   0xd   :  { %165 = vmatpush.msra.mxu1 %v60_v19  ;;  %212 = vmatpush.msra.mxu3 %v91_v21  ;;  %v56_v35 = vld [vmem:[%s4182_s4 + $0xb8] sm:$0xff]  ;;  %v87_v37 = vld [vmem:[%s4182_s4 + $0x1b0] sm:$0xff]  ;;  %v70_v40 = vld [vmem:[%s4182_s4 + $0x128] sm:$0xff] }
   0xe   :  { %143 = vmatpush.msra.mxu0 %v43_v22  ;;  %190 = vmatpush.msra.mxu2 %v74_v24  ;;  %v39_v38 = vld [vmem:[%s4182_s4 + $0x30] sm:$0xff]  ;;  %v86_v41 = vld [vmem:[%s4182_s4 + $0x1a8] sm:$0xff]  ;;  %v69_v44 = vld [vmem:[%s4182_s4 + $0x120] sm:$0xff] }
   0xf   :  { %166 = vmatpush.msra.mxu1 %v59_v23  ;;  %213 = vmatpush.msra.mxu3 %v90_v25  ;;  %v55_v39 = vld [vmem:[%s4182_s4 + $0xb0] sm:$0xff]  ;;  %v38_v42 = vld [vmem:[%s4182_s4 + $0x28] sm:$0xff]  ;;  %v85_v45 = vld [vmem:[%s4182_s4 + $0x1a0] sm:$0xff] }
  0x10   :  { %144 = vmatpush.msra.mxu0 %v42_v26  ;;  %191 = vmatpush.msra.mxu2 %v73_v28  ;;  %v54_v43 = vld [vmem:[%s4182_s4 + $0xa8] sm:$0xff]  ;;  %v37_v46 = vld [vmem:[%s4182_s4 + $0x20] sm:$0xff]  ;;  %v68_v48 = vld [vmem:[%s4182_s4 + $0x118] sm:$0xff] }
  0x11   :  { %167 = vmatpush.msra.mxu1 %v58_v27  ;;  %214 = vmatpush.msra.mxu3 %v89_v29  ;;  %v53_v47 = vld [vmem:[%s4182_s4 + $0xa0] sm:$0xff]  ;;  %v84_v49 = vld [vmem:[%s4182_s4 + $0x198] sm:$0xff] }
  0x12   :  { %145 = vmatpush.msra.mxu0 %v41_v30  ;;  %192 = vmatpush.msra.mxu2 %v72_v32 }
  0x13   :  { %168 = vmatpush.msra.mxu1 %v57_v31  ;;  %215 = vmatpush.msra.mxu3 %v88_v33 }
  0x14   :  { %146 = vmatpush.msra.mxu0 %v40_v34  ;;  %193 = vmatpush.msra.mxu2 %v71_v36 }
  0x15   :  { %169 = vmatpush.msra.mxu1 %v56_v35  ;;  %216 = vmatpush.msra.mxu3 %v87_v37 }
  0x16   :  { %147 = vmatpush.msra.mxu0 %v39_v38  ;;  %194 = vmatpush.msra.mxu2 %v70_v40 }
  0x17   :  { %170 = vmatpush.msra.mxu1 %v55_v39  ;;  %217 = vmatpush.msra.mxu3 %v86_v41 }
  0x18   :  { %148 = vmatpush.msra.mxu0 %v38_v42 }
  0x19   :  { %171 = vmatpush.msra.mxu1 %v54_v43 }
  0x1a   :  { %11 = vsyncpa [#allocation3], 0  ;;  %195 = vmatpush.msra.mxu2 %v69_v44  ;;  %218 = vmatpush.msra.mxu3 %v85_v45  ;;  %v36_v50 = vld [vmem:[%s4182_s4 + $0x18] sm:$0xff]  ;;  %v67_v52 = vld [vmem:[%s4182_s4 + $0x110] sm:$0xff]  ;;  %v2943_v26 = vmov 0   ;;  %vm4201_vm3 = vcmask 64512  }
  0x1b   :  { %v52_v51 = vld [vmem:[%s4182_s4 + $0x98] sm:$0xff]  ;;  %149 = vmatpush.msra.mxu0 %v37_v46  ;;  %172 = vmatpush.msra.mxu1 %v53_v47  ;;  %v83_v53 = vld [vmem:[%s4182_s4 + $0x190] sm:$0xff]  ;;  %v66_v56 = vld [vmem:[%s4182_s4 + $0x108] sm:$0xff]  ;;  %s2944_s24 = smov 16   ;;  %s2945_s25 = smov 17  }
  0x1c   :  { %196 = vmatpush.msra.mxu2 %v68_v48  ;;  %219 = vmatpush.msra.mxu3 %v84_v49  ;;  %v35_v54 = vld [vmem:[%s4182_s4 + $0x10] sm:$0xff]  ;;  %v82_v57 = vld [vmem:[%s4182_s4 + $0x188] sm:$0xff]  ;;  %v65_v60 = vld [vmem:[%s4182_s4 + $0x100] sm:$0xff]  ;;  %s2946_s26 = smov 15   ;;  %s2947_s27 = smov 1  }
  0x1d   :  { %v51_v55 = vld [vmem:[%s4182_s4 + $0x90] sm:$0xff]  ;;  %150 = vmatpush.msra.mxu0 %v36_v50  ;;  %173 = vmatpush.msra.mxu1 %v52_v51  ;;  %v34_v58 = vld [vmem:[%s4182_s4 + $0x8] sm:$0xff]  ;;  %v81_v61 = vld [vmem:[%s4182_s4 + $0x180] sm:$0xff]  ;;  %s2948_s28 = smov 127   ;;  %s2949_s29 = smov 113  }
  0x1e   :  { %197 = vmatpush.msra.mxu2 %v67_v52  ;;  %220 = vmatpush.msra.mxu3 %v83_v53  ;;  %v50_v59 = vld [vmem:[%s4182_s4 + $0x88] sm:$0xff]  ;;  %v3177_v62 = vld [vmem:[%s4178_s0 + $0x10] sm:$0xff]  ;;  %v3182_v63 = vld [vmem:[%s4178_s0 + $0x18] sm:$0xff]  ;;  %s2950_s30 = smov 112   ;;  %s2951_s7 = smov 111  }
  0x1f   :  { %151 = vmatpush.msra.mxu0 %v35_v54  ;;  %174 = vmatpush.msra.mxu1 %v51_v55  ;;  %v33_v0 = vld [vmem:[%s4182_s4] sm:$0xff]  ;;  %v3198_v3 = vld [vmem:[%s4178_s0 + $0x8] sm:$0xff]  ;;  %v136_v4 = vmul.f32 %v3177_v62, %v3177_v62  ;;  %v137_v5 = vmul.f32 %v3182_v63, %v3182_v63  ;;  %v99_v18 = vld [vmem:[%s4183_s5 + $0x10] sm:$0xff]  ;;  %s2618_s23 = sshll.u32 %s4184_s6, 4  ;;  %s2619_s23 = int_to_ptr.hbm [resolvable:$true] %s2618_s23 }
  0x20   :  { %198 = vmatpush.msra.mxu2 %v66_v56  ;;  %221 = vmatpush.msra.mxu3 %v82_v57  ;;  %v49_v1 = vld [vmem:[%s4182_s4 + $0x80] sm:$0xff]  ;;  %v135_v7 = vmul.f32 %v3198_v3, %v3198_v3  ;;  %v98_v17 = vld [vmem:[%s4183_s5 + $0x8] sm:$0xff]  ;;  %v100_v21 = vld [vmem:[%s4183_s5 + $0x18] sm:$0xff] }
  0x21   :  { %152 = vmatpush.msra.mxu0 %v34_v58  ;;  %175 = vmatpush.msra.mxu1 %v50_v59  ;;  %v3193_v2 = vld [vmem:[%s4178_s0] sm:$0xff]  ;;  %v2627_v33 = vld [vmem:[%s4181_s3 + $0x8] sm:$0xff] }
  0x22   :  { %199 = vmatpush.msra.mxu2 %v65_v60  ;;  %222 = vmatpush.msra.mxu3 %v81_v61  ;;  %v134_v6 = vmul.f32 %v3193_v2, %v3193_v2  ;;  %v97_v16 = vld [vmem:[%s4183_s5] sm:$0xff] }
  0x23   :  { %200 = vmatmul.f32.vlgmr.msra.gmra.mxu2 %v3177_v62  ;;  %223 = vmatmul.f32.vlgmr.msra.gmra.mxu3 %v3182_v63  ;;  %v28_v31 = vld [vmem:[%s4181_s3] sm:$0xff] }
  0x24   :  { %153 = vmatpush.msra.mxu0 %v33_v0  ;;  %176 = vmatpush.msra.mxu1 %v49_v1 }
  0x25   :  { %154 = vmatmul.f32.vlgmr.msra.gmra.mxu0 %v3193_v2  ;;  %177 = vmatmul.f32.vlgmr.msra.gmra.mxu1 %v3198_v3 }
  0x26   :  { %268 = vmatpush.msrb.mxu0 %v97_v16  ;;  %291 = vmatpush.msrb.mxu1 %v98_v17 }
  0x27   :  { %314 = vmatpush.msrb.mxu2 %v99_v18  ;;  %337 = vmatpush.msrb.mxu3 %v100_v21  ;;  %v394_v18 = vld [vmem:[%s4179_s1] sm:$0xff] }
  0x28   :  { %2812 = vset.pattern.permute.xlu0 %v2943_v26 }
  0x29   :  { %355 = vperm.xlu0 %2812, %v28_v31  }
  0x2b   :  { %203 = vmatmul.f32.gmra.mxu2 %v136_v4  ;;  %226 = vmatmul.f32.gmra.mxu3 %v137_v5 }
  0x2d   :  { %157 = vmatmul.f32.gmra.mxu0 %v134_v6  ;;  %180 = vmatmul.f32.gmra.mxu1 %v135_v7 }
  0x31   :  { %364 = vperm.xlu0 %2812, %v2627_v33  }
  0x9b   :  { %v356_v44 = vpop.permute.xlu0 %355 }
  0xa2   :  { %v155_v8 = vpop.f32.mrf.mxu0  ;;  %v178_v9 = vpop.f32.mrf.mxu1 }
  0xa3   :  { %v179_v10 = vadd.f32 %v178_v9, %v155_v8  ;;  %v365_v55 = vpop.permute.xlu0 %364 }
  0xa6   :  { %v201_v11 = vpop.f32.mrf.mxu2  ;;  %v224_v12 = vpop.f32.mrf.mxu3 }
  0xa7   :  { %v202_v13 = vadd.f32 %v201_v11, %v179_v10 }
  0xa9   :  { %v225_v19 = vadd.f32 %v224_v12, %v202_v13 }
  0xaa   :  { %v158_v14 = vpop.f32.mrf.mxu0  ;;  %v181_v15 = vpop.f32.mrf.mxu1 }
  0xab   :  { %v182_v20 = vadd.f32 %v181_v15, %v158_v14  ;;  %v230_v24 = vmul.f32 0.00390625, %v225_v19 }
  0xad   :  { %v232_v28 = vmul.f32 %v230_v24, %v230_v24 }
  0xae   :  { %v204_v22 = vpop.f32.mrf.mxu2  ;;  %v227_v23 = vpop.f32.mrf.mxu3 }
  0xaf   :  { %v205_v25 = vadd.f32 %v204_v22, %v182_v20 }
  0xb1   :  { %v228_v27 = vadd.f32 %v227_v23, %v205_v25 }
  0xb3   :  { %v231_v29 = vmul.f32 0.00390625, %v228_v27  ;;  %v2637_v27 = vld [vmem:[%s4179_s1 + $0x20] sm:$0xff] }
  0xb5   :  { %v233_v30 = vsub.f32 %v231_v29, %v232_v28 }
  0xb7   :  { %v234_v32 = vadd.f32 1e-05, %v233_v30 }
  0xb9   :  { %2813 = vrsqrt.f32 %v234_v32  ;;  %vm241_vm1 = vweird.f32 %v234_v32 }
  0xbf   :  { %v2814_v34 = vpop.eup %2813 }
  0xc0   :  { %v236_v35 = vmul.f32 %v2814_v34, %v234_v32  ;;  %vm242_vm0 = vweird.f32 %v2814_v34 }
  0xc1   :  { %vm243_vm2 = vmor %vm241_vm1, %vm242_vm0 }
  0xc2   :  { %v237_v36 = vmul.f32 %v2814_v34, %v236_v35 }
  0xc4   :  { %v238_v37 = vmul.f32 0.5, %v237_v36 }
  0xc6   :  { %v239_v38 = vsub.f32 1.5, %v238_v37  ;;  %v2650_v37 = vld [vmem:[%s4179_s1 + $0x8] sm:$0xff] }
  0xc8   :  { %v240_v39 = vmul.f32 %v2814_v34, %v239_v38 }
  0xca   :  { %v244_v40 = vsel %vm243_vm2, %v2814_v34, %v240_v39  ;;  %v2713_v39 = vld [vmem:[%s4179_s1 + $0x68] sm:$0xff] }
  0xcb   :  { %v245_v41 = vmul.f32 %v244_v40, %v230_v24 }
  0xcd   :  { %2629 = vmatmul.msk.f32.vlgmr.msrb.gmra.mxu0 %vm4201_vm3, %v245_v41  ;;  %2631 = vmatmul.msk.f32.vlgmr.msrb.gmra.mxu1 %vm4201_vm3, %v245_v41 }
  0xce   :  { %2633 = vmatmul.msk.f32.vlgmr.msrb.gmra.mxu2 %vm4201_vm3, %v245_v41  ;;  %2635 = vmatmul.msk.f32.vlgmr.msrb.gmra.mxu3 %vm4201_vm3, %v245_v41 }
  0xd5   :  { %2630 = vmatmul.msk.f32.gmra.mxu0 %vm4201_vm3, %v244_v40  ;;  %2632 = vmatmul.msk.f32.gmra.mxu1 %vm4201_vm3, %v244_v40 }
  0xd6   :  { %2634 = vmatmul.msk.f32.gmra.mxu2 %vm4201_vm3, %v244_v40  ;;  %2636 = vmatmul.msk.f32.gmra.mxu3 %vm4201_vm3, %v244_v40 }
 0x14a   :  { %v270_v42 = vpop.f32.mrf.mxu0  ;;  %v293_v43 = vpop.f32.mrf.mxu1 }
 0x151   :  { %v316_v45 = vpop.f32.mrf.mxu2  ;;  %v339_v46 = vpop.f32.mrf.mxu3 }
 0x152   :  { %v273_v47 = vpop.f32.mrf.mxu0  ;;  %v296_v48 = vpop.f32.mrf.mxu1 }
 0x153   :  { %v345_v49 = vmul.f32 %v273_v47, %v3193_v2  ;;  %v346_v50 = vmul.f32 %v296_v48, %v3198_v3 }
 0x155   :  { %v349_v51 = vsub.f32 %v345_v49, %v270_v42  ;;  %v350_v52 = vsub.f32 %v346_v50, %v293_v43 }
 0x157   :  { %v358_v53 = vmul.f32 %v356_v44, %v349_v51  ;;  %v359_v54 = vmul.f32 %v356_v44, %v350_v52  ;;  %v2659_v52 = vld [vmem:[%s4179_s1 + $0x10] sm:$0xff] }
 0x159   :  { %v3240_v56 = vadd.f32 %v365_v55, %v358_v53  ;;  %v3242_v57 = vadd.f32 %v365_v55, %v359_v54  ;;  %v319_v58 = vpop.f32.mrf.mxu2  ;;  %v342_v59 = vpop.f32.mrf.mxu3 }
 0x15a   :  { %v347_v60 = vmul.f32 %v319_v58, %v3177_v62  ;;  %v348_v61 = vmul.f32 %v342_v59, %v3182_v63  ;;  %v101_v63 = vlaneseq }
 0x15b   :  { %563 = vrot.lane.b32.xlu0 %v3242_v57, %s2944_s24  ;;  %375 = vrot.lane.b32.xlu1 %v3242_v57, %s2945_s25 }
 0x15c   :  { %373 = vrot.lane.b32.xlu2 %v3240_v56, %s2945_s25  ;;  %v351_v0 = vsub.f32 %v347_v60, %v316_v45  ;;  %v352_v1 = vsub.f32 %v348_v61, %v339_v46  ;;  %v3314_v6 = vand.u32 127, %v101_v63  ;;  %v4237_v60 = vmov 0  ;;  %v2668_v61 = vld [vmem:[%s4179_s1 + $0x18] sm:$0xff] }
 0x15e   :  { %v360_v2 = vmul.f32 %v356_v44, %v351_v0  ;;  %v361_v3 = vmul.f32 %v356_v44, %v352_v1  ;;  %v106_v7 = vand.u32 255, %v3314_v6  ;;  %v103_v8 = vadd.s32 128, %v3314_v6 }
 0x15f   :  { %vm4186_vm6 = vcmp.lt.s32.totalorder %v3314_v6, 17  ;;  %v104_v20 = vadd.s32 256, %v3314_v6  ;;  %v105_v23 = vadd.s32 384, %v3314_v6  ;;  %vm4199_vm11 = vcmp.lt.s32.totalorder %v3314_v6, 16 }
 0x160   :  { %v3258_v4 = vadd.f32 %v365_v55, %v360_v2  ;;  %v3260_v62 = vadd.f32 %v365_v55, %v361_v3  ;;  %v3320_v10 = vshra.s32 %v106_v7, 4  ;;  %v3322_v11 = vand.u32 15, %v106_v7  ;;  %v2677_v7 = vld [vmem:[%s4179_s1 + $0x28] sm:$0xff] }
 0x161   :  { %v107_v12 = vand.u32 255, %v103_v8  ;;  %v108_v26 = vand.u32 255, %v104_v20  ;;  %v109_v28 = vand.u32 255, %v105_v23  ;;  %v4250_v23 = vmov 0 }
 0x162   :  { %vm4190_vm4 = vcmp.ge.s32.totalorder %v3320_v10, 1  ;;  %vm4187_vm5 = vcmp.ge.s32.totalorder %v3322_v11, 1  ;;  %vm4192_vm2 = vcmp.lt.s32.totalorder %v3322_v11, 15 }
 0x163   :  { %669 = vrot.lane.b32.xlu1 %v3242_v57, %s2946_s26  ;;  %561 = vrot.lane.b32.xlu0 %v3240_v56, %s2944_s24  ;;  %vm3331_vm7 = vmand %vm4190_vm4, %vm4187_vm5  ;;  %v3335_v14 = vshra.s32 %v107_v12, 4  ;;  %v3337_v15 = vand.u32 15, %v107_v12  ;;  %v3375_v29 = vshra.s32 %v108_v26, 4  ;;  %v3377_v30 = vand.u32 15, %v108_v26  ;;  %v2686_v26 = vld [vmem:[%s4179_s1 + $0x30] sm:$0xff] }
 0x164   :  { %779 = vrot.lane.b32.xlu2 %v3242_v57, %s2947_s27  ;;  %v3379_v33 = vshra.s32 %v109_v28, 4  ;;  %v3381_v34 = vand.u32 15, %v109_v28  ;;  %v4246_v12 = vmov 0  ;;  %v4257_v28 = vmov 0 }
 0x165   :  { %vm4191_vm8 = vcmp.ge.s32.totalorder %v3335_v14, 1  ;;  %vm4193_vm9 = vcmp.ge.s32.totalorder %v3337_v15, 1  ;;  %vm4197_vm12 = vcmp.ge.s32.totalorder %v3375_v29, 1  ;;  %vm4188_vm13 = vcmp.ge.s32.totalorder %v3377_v30, 1 }
 0x166   :  { %vm3354_vm10 = vmand %vm4191_vm8, %vm4193_vm9  ;;  %vm4189_vm14 = vcmp.ge.s32.totalorder %v3379_v33, 1  ;;  %vm4185_vm15 = vcmp.ge.s32.totalorder %v3381_v34, 1 }
 0x167   :  { %vm3406_vm0 = vmand %vm4197_vm12, %vm4188_vm13  ;;  %vm4196_vm13 = vcmp.lt.s32.totalorder %v3314_v6, 15 }
 0x168   :  { %vm3414_vm1 = vmand %vm4189_vm14, %vm4185_vm15  ;;  %vm4194_vm15 = vcmp.lt.s32.totalorder %v3337_v15, 15  ;;  %vm4198_vm14 = vcmp.lt.s32.totalorder %v3314_v6, 1 }
 0x169   :  { %vm3447_vm5 = vmand %vm4191_vm8, %vm4194_vm15 }
 0x16b   :  { %377 = vrot.lane.b32.xlu1 %v3258_v4, %s2945_s25  ;;  %885 = vrot.lane.b32.xlu0 %v3242_v57, %s2948_s28 }
 0x16c   :  { %379 = vrot.lane.b32.xlu2 %v3260_v62, %s2945_s25 }
 0x173   :  { %667 = vrot.lane.b32.xlu1 %v3240_v56, %s2946_s26  ;;  %673 = vrot.lane.b32.xlu0 %v3260_v62, %s2946_s26 }
 0x174   :  { %567 = vrot.lane.b32.xlu2 %v3260_v62, %s2944_s24 }
 0x17b   :  { %565 = vrot.lane.b32.xlu1 %v3258_v4, %s2944_s24  ;;  %781 = vrot.lane.b32.xlu0 %v3258_v4, %s2947_s27 }
 0x17c   :  { %671 = vrot.lane.b32.xlu2 %v3258_v4, %s2946_s26 }
 0x183   :  { %783 = vrot.lane.b32.xlu1 %v3260_v62, %s2947_s27  ;;  %887 = vrot.lane.b32.xlu0 %v3258_v4, %s2948_s28 }
 0x184   :  { %777 = vrot.lane.b32.xlu2 %v3240_v56, %s2947_s27 }
 0x18b   :  { %991 = vrot.lane.b32.xlu1 %v3242_v57, %s2949_s29  ;;  %989 = vrot.lane.b32.xlu0 %v3240_v56, %s2949_s29 }
 0x18c   :  { %883 = vrot.lane.b32.xlu2 %v3240_v56, %s2948_s28 }
 0x193   :  { %889 = vrot.lane.b32.xlu1 %v3260_v62, %s2948_s28  ;;  %1105 = vrot.lane.b32.xlu0 %v3260_v62, %s2950_s30 }
 0x194   :  { %995 = vrot.lane.b32.xlu2 %v3260_v62, %s2949_s29 }
 0x19b   :  { %993 = vrot.lane.b32.xlu1 %v3258_v4, %s2949_s29  ;;  %1209 = vrot.lane.b32.xlu0 %v3258_v4, %s2951_s7 }
 0x19c   :  { %1103 = vrot.lane.b32.xlu2 %v3258_v4, %s2950_s30 }
 0x1a3   :  { %1099 = vrot.lane.b32.xlu1 %v3240_v56, %s2950_s30  ;;  %1207 = vrot.lane.b32.xlu0 %v3242_v57, %s2951_s7 }
 0x1a4   :  { %1101 = vrot.lane.b32.xlu2 %v3242_v57, %s2950_s30 }
 0x1ab   :  { %1211 = vrot.lane.b32.xlu1 %v3260_v62, %s2951_s7 }
 0x1ac   :  { %1205 = vrot.lane.b32.xlu2 %v3240_v56, %s2951_s7 }
 0x1b6   :  { %v374_v5 = vpop.permute.xlu2 %373 }
 0x1be   :  { %v3318_v9 = vpop.permute.xlu2 %779 }
 0x1c6   :  { %v380_v16 = vpop.permute.xlu2 %379 }
 0x1c7   :  { %v385_v17 = vsel %vm4186_vm6, %v380_v16, %v374_v5 }
 0x1c8   :  { %2638 = vmatpush.msk.msra.mxu0 %vm3331_vm7, %v385_v17 }
 0x1c9   :  { %2639 = vmatmul.msk.f32.vlgmr.msra.gmra.mxu0 %vm4201_vm3, %v394_v18 }
 0x1ca   :  { %496 = vmatpush.msrb.mxu0 %v3240_v56 }
 0x1cd   :  { %v3359_v21 = vpop.permute.xlu0 %563  ;;  %v376_v22 = vpop.permute.xlu1 %375 }
 0x1ce   :  { %v384_v24 = vsel %vm4186_vm6, %v374_v5, %v376_v22  ;;  %v3366_v25 = vpop.permute.xlu2 %567 }
 0x1cf   :  { %2640 = vmatpush.msk.msra.mxu1 %vm3354_vm10, %v384_v24 }
 0x1d0   :  { %2641 = vmatmul.msk.f32.vlgmr.msra.gmra.mxu1 %vm4201_vm3, %v394_v18 }
 0x1d1   :  { %516 = vmatpush.msrb.mxu1 %v3242_v57  ;;  %2646 = vmatmul.msk.f32.vlgmr.msrb.gmra.mxu0 %vm4201_vm3, %v2637_v27 }
 0x1d5   :  { %v670_v31 = vpop.permute.xlu1 %669  ;;  %v562_v32 = vpop.permute.xlu0 %561 }
 0x1d6   :  { %v572_v35 = vsel %vm4199_vm11, %v562_v32, %v3359_v21  ;;  %v573_v36 = vsel %vm4199_vm11, %v3366_v25, %v562_v32  ;;  %v672_v38 = vpop.permute.xlu2 %671  ;;  %v4261_v32 = vmov 0 }
 0x1d7   :  { %2651 = vmatpush.msk.msra.mxu0 %vm4190_vm4, %v573_v36  ;;  %2653 = vmatpush.msk.msra.mxu1 %vm4191_vm8, %v572_v35  ;;  %vm4207_vm8 = vcmp.lt.s32.totalorder %v3381_v34, 15  ;;  %v677_v0 = vsel %vm4196_vm13, %v670_v31, %v672_v38 }
 0x1d8   :  { %2647 = vmatmul.msk.f32.vlgmr.msrb.gmra.mxu1 %vm4201_vm3, %v2637_v27 }
 0x1d9   :  { %2652 = vmatmul.msk.f32.vlgmr.msra.gmra.mxu0 %vm4201_vm3, %v2650_v37 }
 0x1dd   :  { %v378_v41 = vpop.permute.xlu1 %377  ;;  %v3418_v42 = vpop.permute.xlu0 %885 }
 0x1de   :  { %v382_v43 = vsel %vm4186_vm6, %v378_v41, %v380_v16  ;;  %v383_v44 = vsel %vm4186_vm6, %v376_v22, %v378_v41  ;;  %vm3439_vm6 = vmand %vm4190_vm4, %vm4192_vm2  ;;  %v778_v46 = vpop.permute.xlu2 %777  ;;  %vm4195_vm4 = vcmp.lt.s32.totalorder %v3377_v30, 15 }
 0x1df   :  { %2642 = vmatpush.msk.msra.mxu2 %vm3406_vm0, %v383_v44  ;;  %2644 = vmatpush.msk.msra.mxu3 %vm3414_vm1, %v382_v43  ;;  %v788_v53 = vsel %vm4198_vm14, %v778_v46, %v3318_v9  ;;  %vm3479_vm2 = vmand %vm4197_vm12, %vm4195_vm4 }
 0x1e0   :  { %2643 = vmatmul.msk.f32.vlgmr.msra.gmra.mxu2 %vm4201_vm3, %v394_v18  ;;  %2645 = vmatmul.msk.f32.vlgmr.msra.gmra.mxu3 %vm4201_vm3, %v394_v18 }
 0x1e1   :  { %536 = vmatpush.msrb.mxu2 %v3258_v4  ;;  %556 = vmatpush.msrb.mxu3 %v3260_v62 }
 0x1e2   :  { %2654 = vmatmul.msk.f32.vlgmr.msra.gmra.mxu1 %vm4201_vm3, %v2650_v37 }
 0x1e5   :  { %v668_v48 = vpop.permute.xlu1 %667  ;;  %v674_v49 = vpop.permute.xlu0 %673 }
 0x1e6   :  { %v678_v50 = vsel %vm4196_vm13, %v668_v48, %v670_v31  ;;  %v679_v51 = vsel %vm4196_vm13, %v674_v49, %v668_v48  ;;  %v884_v57 = vpop.permute.xlu2 %883  ;;  %v676_v1 = vsel %vm4196_vm13, %v672_v38, %v674_v49  ;;  %vm4241_vm13 = vcmp.ge.s32.totalorder %v3322_v11, 1  ;;  %v2695_v48 = vld [vmem:[%s4179_s1 + $0x38] sm:$0xff] }
 0x1e7   :  { %2660 = vmatpush.msk.msrb.mxu0 %vm3439_vm6, %v679_v51  ;;  %2662 = vmatpush.msk.msrb.mxu1 %vm3447_vm5, %v678_v50 }
 0x1e8   :  { %2648 = vmatmul.msk.f32.vlgmr.msrb.gmra.mxu2 %vm4201_vm3, %v2637_v27  ;;  %2649 = vmatmul.msk.f32.vlgmr.msrb.gmra.mxu3 %vm4201_vm3, %v2637_v27 }
 0x1e9   :  { %2671 = vmatpush.msk.msra.mxu1 %vm4193_vm9, %v788_v53  ;;  %2661 = vmatmul.msk.f32.vlgmr.msrb.gmra.mxu0 %vm4201_vm3, %v2659_v52  ;;  %vm4236_vm9 = vcmp.ge.s32.totalorder %v3379_v33, 1 }
 0x1ea   :  { %2663 = vmatmul.msk.f32.vlgmr.msrb.gmra.mxu1 %vm4201_vm3, %v2659_v52  ;;  %vm3493_vm15 = vmand %vm4236_vm9, %vm4207_vm8 }
 0x1eb   :  { %v4238_v60 = vsel %vm3493_vm15, 4294967295, %v4237_v60  ;;  %vm4239_vm4 = vmmov %vm4236_vm9  ;;  %vm4202_vm9 = vcmp.lt.s32.totalorder %v3314_v6, 127 }
 0x1ed   :  { %v566_v54 = vpop.permute.xlu1 %565  ;;  %v782_v55 = vpop.permute.xlu0 %781 }
 0x1ee   :  { %v570_v58 = vsel %vm4199_vm11, %v566_v54, %v3366_v25  ;;  %v571_v59 = vsel %vm4199_vm11, %v3359_v21, %v566_v54  ;;  %v787_v2 = vsel %vm4198_vm14, %v3318_v9, %v782_v55  ;;  %v996_v8 = vpop.permute.xlu2 %995  ;;  %v894_v9 = vsel %vm4202_vm9, %v884_v57, %v3418_v42 }
 0x1ef   :  { %2655 = vmatpush.msk.msra.mxu2 %vm4197_vm12, %v571_v59  ;;  %2657 = vmatpush.msk.msra.mxu3 %vm4239_vm4, %v570_v58  ;;  %vm4240_vm4 = vcmp.ge.s32.totalorder %v3377_v30, 1  ;;  %vm4242_vm12 = vcmp.ge.s32.totalorder %v3381_v34, 1  ;;  %v4277_v54 = vmov 0  ;;  %v2704_v59 = vld [vmem:[%s4179_s1 + $0x40] sm:$0xff] }
 0x1f0   :  { %2656 = vmatmul.msk.f32.vlgmr.msra.gmra.mxu2 %vm4201_vm3, %v2650_v37  ;;  %2658 = vmatmul.msk.f32.vlgmr.msra.gmra.mxu3 %vm4201_vm3, %v2650_v37 }
 0x1f1   :  { %2664 = vmatpush.msk.msrb.mxu2 %vm3479_vm2, %v677_v0  ;;  %2666 = vmatpush.msk.msrb.mxu3 %vm3493_vm15, %v676_v1  ;;  %vm4208_vm15 = vcmp.lt.s32.totalorder %v3375_v29, 15 }
 0x1f2   :  { %2672 = vmatmul.msk.f32.vlgmr.msra.gmra.mxu1 %vm4201_vm3, %v2668_v61 }
 0x1f3   :  { %2673 = vmatpush.msk.msra.mxu2 %vm4240_vm4, %v787_v2  ;;  %vm4243_vm4 = vcmp.lt.s32.totalorder %v3337_v15, 15 }
 0x1f5   :  { %v784_v3 = vpop.permute.xlu1 %783  ;;  %v888_v4 = vpop.permute.xlu0 %887 }
 0x1f6   :  { %v786_v62 = vsel %vm4198_vm14, %v782_v55, %v784_v3  ;;  %v789_v63 = vsel %vm4198_vm14, %v784_v3, %v778_v46  ;;  %v893_v5 = vsel %vm4202_vm9, %v3418_v42, %v888_v4  ;;  %vm4206_vm14 = vcmp.lt.s32.totalorder %v3314_v6, 113  ;;  %v1104_v20 = vpop.permute.xlu2 %1103 }
 0x1f7   :  { %2669 = vmatpush.msk.msra.mxu0 %vm4241_vm13, %v789_v63  ;;  %2675 = vmatpush.msk.msra.mxu3 %vm4242_vm12, %v786_v62  ;;  %vm4200_vm12 = vcmp.lt.s32.totalorder %v3320_v10, 15  ;;  %vm4244_vm13 = vcmp.lt.s32.totalorder %v3322_v11, 15  ;;  %v4270_v46 = vmov 0  ;;  %v4286_v55 = vmov 0 }
 0x1f8   :  { %2680 = vmatpush.msk.msrb.mxu1 %vm4243_vm4, %v893_v5  ;;  %2665 = vmatmul.msk.f32.vlgmr.msrb.gmra.mxu2 %vm4201_vm3, %v2659_v52  ;;  %vm4245_vm4 = vcmp.ge.s32.totalorder %v3322_v11, 1 }
 0x1f9   :  { %2667 = vmatmul.msk.f32.vlgmr.msrb.gmra.mxu3 %vm4201_vm3, %v2659_v52  ;;  %2670 = vmatmul.msk.f32.vlgmr.msra.gmra.mxu0 %vm4201_vm3, %v2668_v61  ;;  %vm3552_vm11 = vmand %vm4200_vm12, %vm4245_vm4  ;;  %vm4249_vm4 = vcmp.ge.s32.totalorder %v3381_v34, 1 }
 0x1fa   :  { %2678 = vmatpush.msk.msrb.mxu0 %vm4244_vm13, %v894_v9  ;;  %2681 = vmatmul.msk.f32.vlgmr.msrb.gmra.mxu1 %vm4201_vm3, %v2677_v7  ;;  %v4247_v12 = vsel %vm3552_vm11, 4294967295, %v4246_v12  ;;  %vm4203_vm13 = vcmp.lt.s32.totalorder %v3379_v33, 15 }
 0x1fb   :  { %4248 = vst [vmem:[#allocation5_spill] sm:$0xff] %v4247_v12  ;;  %vm3568_vm12 = vmand %vm4203_vm13, %vm4249_vm4  ;;  %vm4253_vm4 = vcmask 64512  }
 0x1fc   :  { %v4251_v23 = vsel %vm3568_vm12, 4294967295, %v4250_v23  ;;  %vm4254_vm13 = vmmov %vm4253_vm4 }
 0x1fd   :  { %v992_v16 = vpop.permute.xlu1 %991  ;;  %v990_v17 = vpop.permute.xlu0 %989 }
 0x1fe   :  { %v1000_v18 = vsel %vm4206_vm14, %v990_v17, %v992_v16  ;;  %v1001_v27 = vsel %vm4206_vm14, %v996_v8, %v990_v17  ;;  %vm4256_vm14 = vcmp.ge.s32.totalorder %v3337_v15, 1  ;;  %v1102_v31 = vpop.permute.xlu2 %1101 }
 0x1ff   :  { %2687 = vmatpush.msk.msra.mxu0 %vm3552_vm11, %v1000_v18  ;;  %vm4255_vm11 = vmmov %vm4253_vm4 }
 0x200   :  { %2674 = vmatmul.msk.f32.vlgmr.msra.gmra.mxu2 %vm4201_vm3, %v2668_v61 }
 0x201   :  { %2676 = vmatmul.msk.f32.vlgmr.msra.gmra.mxu3 %vm4201_vm3, %v2668_v61  ;;  %2679 = vmatmul.msk.f32.vlgmr.msrb.gmra.mxu0 %vm4201_vm3, %v2677_v7  ;;  %vm4252_vm3 = vcmp.lt.s32.totalorder %v3377_v30, 15 }
 0x205   :  { %v890_v21 = vpop.permute.xlu1 %889  ;;  %v1106_v22 = vpop.permute.xlu0 %1105 }
 0x206   :  { %v892_v24 = vsel %vm4202_vm9, %v888_v4, %v890_v21  ;;  %v895_v25 = vsel %vm4202_vm9, %v890_v21, %v884_v57  ;;  %vm4211_vm9 = vcmp.lt.s32.totalorder %v3335_v14, 15  ;;  %v1206_v49 = vpop.permute.xlu2 %1205  ;;  %v4291_v57 = vmov 0 }
 0x207   :  { %2682 = vmatpush.msk.msrb.mxu2 %vm4252_vm3, %v892_v24  ;;  %2684 = vmatpush.msk.msrb.mxu3 %vm4207_vm8, %v895_v25  ;;  %vm3596_vm3 = vmand %vm4211_vm9, %vm4256_vm14 }
 0x208   :  { %2683 = vmatmul.msk.f32.vlgmr.msrb.gmra.mxu2 %vm4253_vm4, %v2677_v7  ;;  %v4258_v28 = vsel %vm3596_vm3, 4294967295, %v4257_v28  ;;  %vm4260_vm4 = vcmp.ge.s32.totalorder %v3377_v30, 1 }
 0x209   :  { %2693 = vmatpush.msk.msra.mxu3 %vm3568_vm12, %v1001_v27  ;;  %2688 = vmatmul.msk.f32.vlgmr.msra.gmra.mxu0 %vm4255_vm11, %v2686_v26  ;;  %4259 = vst [vmem:[#allocation6_spill] sm:$0xff] %v4258_v28  ;;  %vm3604_vm8 = vmand %vm4208_vm15, %vm4260_vm4  ;;  %vm4212_vm11 = vcmp.lt.s32.totalorder %v3314_v6, 112  ;;  %vm4265_vm4 = vcmask 64512  }
 0x20a   :  { %2685 = vmatmul.msk.f32.vlgmr.msrb.gmra.mxu3 %vm4254_vm13, %v2677_v7  ;;  %v4262_v32 = vsel %vm3604_vm8, 4294967295, %v4261_v32  ;;  %vm4263_vm13 = vcmp.lt.s32.totalorder %v3314_v6, 113  ;;  %v1109_v41 = vsel %vm4212_vm11, %v1102_v31, %v1104_v20  ;;  %vm4266_vm15 = vmmov %vm4265_vm4  ;;  %v1108_v42 = vsel %vm4212_vm11, %v1104_v20, %v1106_v22 }
 0x20b   :  { %vm4264_vm14 = vmmov %vm4263_vm13 }
 0x20d   :  { %v994_v35 = vpop.permute.xlu1 %993  ;;  %v1210_v36 = vpop.permute.xlu0 %1209 }
 0x20e   :  { %v998_v37 = vsel %vm4263_vm13, %v994_v35, %v996_v8  ;;  %v999_v38 = vsel %vm4264_vm14, %v992_v16, %v994_v35  ;;  %vm4267_vm13 = vmmov %vm4265_vm4  ;;  %vm4268_vm14 = vcmp.lt.s32.totalorder %v3375_v29, 15 }
 0x20f   :  { %2689 = vmatpush.msk.msra.mxu1 %vm3596_vm3, %v999_v38  ;;  %2691 = vmatpush.msk.msra.mxu2 %vm3604_vm8, %v998_v37  ;;  %vm4213_vm3 = vcmp.lt.s32.totalorder %v3314_v6, 111  ;;  %vm4269_vm8 = vcmp.lt.s32.totalorder %v3337_v15, 15 }
 0x210   :  { %2690 = vmatmul.msk.f32.vlgmr.msra.gmra.mxu1 %vm4265_vm4, %v2686_v26  ;;  %2692 = vmatmul.msk.f32.vlgmr.msra.gmra.mxu2 %vm4266_vm15, %v2686_v26  ;;  %vm3633_vm15 = vmand %vm4211_vm9, %vm4269_vm8  ;;  %vm4273_vm8 = vcmp.lt.s32.totalorder %v3320_v10, 15  ;;  %vm4274_vm4 = vcmp.lt.s32.totalorder %v3379_v33, 15 }
 0x211   :  { %2698 = vmatpush.msk.msrb.mxu1 %vm4211_vm9, %v1109_v41  ;;  %2700 = vmatpush.msk.msrb.mxu2 %vm4268_vm14, %v1108_v42  ;;  %v4271_v46 = vsel %vm3633_vm15, 4294967295, %v4270_v46  ;;  %vm4276_vm14 = vmmov %vm4273_vm8 }
 0x212   :  { %2694 = vmatmul.msk.f32.vlgmr.msra.gmra.mxu3 %vm4267_vm13, %v2686_v26  ;;  %4272 = vst [vmem:[#allocation7_spill] sm:$0xff] %v4271_v46  ;;  %vm4275_vm13 = vcmp.lt.s32.totalorder %v3322_v11, 15 }
 0x213   :  { %vm3656_vm9 = vmand %vm4276_vm14, %vm4275_vm13  ;;  %vm4285_vm13 = vcmp.lt.s32.totalorder %v3375_v29, 15 }
 0x214   :  { %v4278_v54 = vsel %vm3656_vm9, 4294967295, %v4277_v54 }
 0x215   :  { %v1100_v43 = vpop.permute.xlu1 %1099  ;;  %v1208_v44 = vpop.permute.xlu0 %1207  ;;  %4279 = vst [vmem:[#allocation8_spill] sm:$0xff] %v4278_v54 }
 0x216   :  { %v1110_v50 = vsel %vm4212_vm11, %v1100_v43, %v1102_v31  ;;  %v1111_v51 = vsel %vm4212_vm11, %v1106_v22, %v1100_v43  ;;  %v1215_v52 = vsel %vm4213_vm3, %v1208_v44, %v1210_v36  ;;  %v1216_v53 = vsel %vm4213_vm3, %v1206_v49, %v1208_v44 }
 0x217   :  { %2696 = vmatpush.msk.msrb.mxu0 %vm4273_vm8, %v1110_v50  ;;  %2702 = vmatpush.msk.msrb.mxu3 %vm4274_vm4, %v1111_v51  ;;  %vm4280_vm11 = vcmask 64512   ;;  %vm4284_vm4 = vcmp.lt.s32.totalorder %v3377_v30, 15 }
 0x218   :  { %2707 = vmatpush.msk.msra.mxu1 %vm3633_vm15, %v1215_v52  ;;  %2697 = vmatmul.msk.f32.vlgmr.msrb.gmra.mxu0 %vm4280_vm11, %v2695_v48  ;;  %vm4281_vm3 = vmmov %vm4280_vm11  ;;  %vm4289_vm15 = vcmp.lt.s32.totalorder %v3381_v34, 15  ;;  %vm4290_vm11 = vcmp.lt.s32.totalorder %v3379_v33, 15 }
 0x219   :  { %2699 = vmatmul.msk.f32.vlgmr.msrb.gmra.mxu1 %vm4281_vm3, %v2695_v48  ;;  %vm4282_vm12 = vmmov %vm4281_vm3  ;;  %2705 = vmatpush.msk.msra.mxu0 %vm3656_vm9, %v1216_v53 }
 0x21a   :  { %2701 = vmatmul.msk.f32.vlgmr.msrb.gmra.mxu2 %vm4282_vm12, %v2695_v48  ;;  %vm4283_vm8 = vmmov %vm4281_vm3  ;;  %vm4294_vm12 = vcmp.lt.s32.totalorder %v3314_v6, 111 }
 0x21b   :  { %2703 = vmatmul.msk.f32.vlgmr.msrb.gmra.mxu3 %vm4283_vm8, %v2695_v48  ;;  %vm3672_vm14 = vmand %vm4285_vm13, %vm4284_vm4 }
 0x21c   :  { %v4287_v55 = vsel %vm3672_vm14, 4294967295, %v4286_v55  ;;  %vm3680_vm3 = vmand %vm4290_vm11, %vm4289_vm15  ;;  %vm4296_vm15 = vcmask 64512  }
 0x21d   :  { %4288 = vst [vmem:[#allocation9_spill] sm:$0xff] %v4287_v55  ;;  %v4292_v57 = vsel %vm3680_vm3, 4294967295, %v4291_v57  ;;  %v1212_v58 = vpop.permute.xlu1 %1211  ;;  %vm4295_vm8 = vmmov %vm4294_vm12 }
 0x21e   :  { %4293 = vst [vmem:[#allocation10_spill] sm:$0xff] %v4292_v57  ;;  %v1214_v61 = vsel %vm4294_vm12, %v1210_v36, %v1212_v58  ;;  %v1217_v0 = vsel %vm4295_vm8, %v1212_v58, %v1206_v49  ;;  %vm4297_vm4 = vmmov %vm4296_vm15 }
 0x21f   :  { %2709 = vmatpush.msk.msra.mxu2 %vm3672_vm14, %v1214_v61  ;;  %2711 = vmatpush.msk.msra.mxu3 %vm3680_vm3, %v1217_v0  ;;  %vm4298_vm13 = vmmov %vm4297_vm4 }
 0x220   :  { %2706 = vmatmul.msk.f32.vlgmr.msra.gmra.mxu0 %vm4296_vm15, %v2704_v59  ;;  %vm4299_vm11 = vmmov %vm4297_vm4 }
 0x221   :  { %2708 = vmatmul.msk.f32.vlgmr.msra.gmra.mxu1 %vm4297_vm4, %v2704_v59 }
 0x222   :  { %2710 = vmatmul.msk.f32.vlgmr.msra.gmra.mxu2 %vm4298_vm13, %v2704_v59  ;;  %vm4300_vm13 = vcmp.lt.s32.totalorder %v3314_v6, 17 }
 0x223   :  { %2712 = vmatmul.msk.f32.vlgmr.msra.gmra.mxu3 %vm4299_vm11, %v2704_v59 }
 0x246   :  { %v415_v2 = vpop.f32.mrf.mxu0 }
 0x24d   :  { %v435_v1 = vpop.f32.mrf.mxu1 }
 0x24e   :  { %v498_v4 = vpop.f32.mrf.mxu0 }
 0x24f   :  { %v499_v37 = vadd.f32 %v498_v4, %v415_v2 }
 0x255   :  { %v518_v3 = vpop.f32.mrf.mxu1 }
 0x256   :  { %v600_v7 = vpop.f32.mrf.mxu0  ;;  %v519_v43 = vadd.f32 %v518_v3, %v435_v1 }
 0x257   :  { %v663_v44 = vadd.f32 %v600_v7, %v499_v37 }
 0x25f   :  { %v620_v5 = vpop.f32.mrf.mxu1 }
 0x260   :  { %v664_v48 = vadd.f32 %v620_v5, %v519_v43 }
 0x263   :  { %v455_v62 = vpop.f32.mrf.mxu2  ;;  %v475_v63 = vpop.f32.mrf.mxu3 }
 0x266   :  { %v710_v17 = vpop.f32.mrf.mxu0 }
 0x267   :  { %v730_v16 = vpop.f32.mrf.mxu1  ;;  %v773_v50 = vadd.f32 %v710_v17, %v663_v44 }
 0x268   :  { %v774_v52 = vadd.f32 %v730_v16, %v664_v48 }
 0x26b   :  { %v538_v8 = vpop.f32.mrf.mxu2  ;;  %v558_v9 = vpop.f32.mrf.mxu3 }
 0x26c   :  { %v539_v53 = vadd.f32 %v538_v8, %v455_v62  ;;  %v559_v57 = vadd.f32 %v558_v9, %v475_v63 }
 0x26f   :  { %v836_v22 = vpop.f32.mrf.mxu1 }
 0x270   :  { %v880_v0 = vadd.f32 %v836_v22, %v774_v52 }
 0x273   :  { %v640_v18 = vpop.f32.mrf.mxu2  ;;  %v660_v20 = vpop.f32.mrf.mxu3 }
 0x274   :  { %v665_v46 = vadd.f32 %v640_v18, %v539_v53  ;;  %v666_v2 = vadd.f32 %v660_v20, %v559_v57 }
 0x276   :  { %v816_v21 = vpop.f32.mrf.mxu0 }
 0x277   :  { %v942_v35 = vpop.f32.mrf.mxu1  ;;  %v879_v59 = vadd.f32 %v816_v21, %v773_v50 }
 0x278   :  { %v986_v55 = vadd.f32 %v942_v35, %v880_v0 }
 0x27b   :  { %v750_v24 = vpop.f32.mrf.mxu2 }
 0x27c   :  { %v770_v25 = vpop.f32.mrf.mxu3  ;;  %v775_v28 = vadd.f32 %v750_v24, %v665_v46 }
 0x27d   :  { %v776_v1 = vadd.f32 %v770_v25, %v666_v2 }
 0x27e   :  { %v922_v26 = vpop.f32.mrf.mxu0 }
 0x27f   :  { %v985_v54 = vadd.f32 %v922_v26, %v879_v59 }
 0x283   :  { %v856_v27 = vpop.f32.mrf.mxu2 }
 0x284   :  { %v876_v31 = vpop.f32.mrf.mxu3  ;;  %v881_v7 = vadd.f32 %v856_v27, %v775_v28 }
 0x285   :  { %v882_v62 = vadd.f32 %v876_v31, %v776_v1 }
 0x286   :  { %v1032_v41 = vpop.f32.mrf.mxu0 }
 0x287   :  { %v1095_v4 = vadd.f32 %v1032_v41, %v985_v54 }
 0x28b   :  { %v962_v36 = vpop.f32.mrf.mxu2 }
 0x28c   :  { %v987_v43 = vadd.f32 %v962_v36, %v881_v7 }
 0x28d   :  { %v982_v38 = vpop.f32.mrf.mxu3  ;;  %v1052_v42 = vpop.f32.mrf.mxu1 }
 0x28e   :  { %v1096_v12 = vadd.f32 %v1052_v42, %v986_v55  ;;  %v988_v63 = vadd.f32 %v982_v38, %v882_v62 }
 0x293   :  { %v1072_v49 = vpop.f32.mrf.mxu2 }
 0x294   :  { %v1097_v18 = vadd.f32 %v1072_v49, %v987_v43  ;;  %v2714_v43 = vld [vmem:[%s4179_s1 + $0x48] sm:$0xff] }
 0x295   :  { %v1092_v51 = vpop.f32.mrf.mxu3  ;;  %v1138_v58 = vpop.f32.mrf.mxu0 }
 0x296   :  { %v1158_v61 = vpop.f32.mrf.mxu1  ;;  %v1201_v3 = vadd.f32 %v1138_v58, %v1095_v4  ;;  %v1098_v57 = vadd.f32 %v1092_v51, %v988_v63 }
 0x297   :  { %v1202_v17 = vadd.f32 %v1158_v61, %v1096_v12 }
 0x29d   :  { %v1178_v5 = vpop.f32.mrf.mxu2  ;;  %v1248_v16 = vpop.f32.mrf.mxu0 }
 0x29e   :  { %v1198_v37 = vpop.f32.mrf.mxu3  ;;  %v1311_v8 = vadd.f32 %v1248_v16, %v1201_v3  ;;  %v1268_v21 = vpop.f32.mrf.mxu1  ;;  %v1203_v46 = vadd.f32 %v1178_v5, %v1097_v18 }
 0x29f   :  { %v1312_v22 = vadd.f32 %v1268_v21, %v1202_v17  ;;  %v1204_v20 = vadd.f32 %v1198_v37, %v1098_v57  ;;  %v2628_v17 = vld [vmem:[%s4181_s3 + $0x10] sm:$0xff] }
 0x2a0   :  { %v1319_v9 = vmin.f32 %v1311_v8, 20.0  ;;  %vm1315_vm4 = vcmp.gt.f32.partialorder %v1311_v8, 20.0 }
 0x2a1   :  { %v1320_v26 = vmin.f32 %v1312_v22, 20.0  ;;  %vm1316_vm12 = vcmp.gt.f32.partialorder %v1312_v22, 20.0 }
 0x2a2   :  { %v1323_v54 = vmul.f32 1.442695, %v1319_v9 }
 0x2a3   :  { %v1325_v55 = vmul.f32 1.442695, %v1320_v26 }
 0x2a5   :  { %v1288_v24 = vpop.f32.mrf.mxu2  ;;  %2815 = vpow2.f32 %v1325_v55 }
 0x2a6   :  { %v1313_v28 = vadd.f32 %v1288_v24, %v1203_v46  ;;  %v1308_v12 = vpop.f32.mrf.mxu3  ;;  %2817 = vpow2.f32 %v1323_v54 }
 0x2a7   :  { %v1314_v25 = vadd.f32 %v1308_v12, %v1204_v20  ;;  %v2727_v20 = vld [vmem:[%s4179_s1 + $0x50] sm:$0xff] }
 0x2a8   :  { %v1321_v27 = vmin.f32 %v1313_v28, 20.0  ;;  %vm1317_vm8 = vcmp.gt.f32.partialorder %v1313_v28, 20.0 }
 0x2a9   :  { %v1322_v31 = vmin.f32 %v1314_v25, 20.0  ;;  %vm1318_vm15 = vcmp.gt.f32.partialorder %v1314_v25, 20.0 }
 0x2aa   :  { %v1327_v35 = vmul.f32 1.442695, %v1321_v27 }
 0x2ab   :  { %v1329_v36 = vmul.f32 1.442695, %v1322_v31  ;;  %v2816_v41 = vpop.eup %2815 }
 0x2ac   :  { %2819 = vpow2.f32 %v1327_v35  ;;  %v2818_v38 = vpop.eup %2817  ;;  %v1332_v42 = vadd.f32 1.0, %v2816_v41 }
 0x2ad   :  { %2821 = vpow2.f32 %v1329_v36  ;;  %v1331_v44 = vadd.f32 1.0, %v2818_v38  ;;  %v2736_v36 = vld [vmem:[%s4179_s1 + $0x58] sm:$0xff] }
 0x2ae   :  { %2823 = vlog2.f32 %v1332_v42 }
 0x2af   :  { %2825 = vlog2.f32 %v1331_v44 }
 0x2b2   :  { %v2820_v48 = vpop.eup %2819 }
 0x2b3   :  { %v2822_v49 = vpop.eup %2821  ;;  %v1333_v50 = vadd.f32 1.0, %v2820_v48 }
 0x2b4   :  { %v1334_v51 = vadd.f32 1.0, %v2822_v49  ;;  %v2824_v52 = vpop.eup %2823  ;;  %v2745_v49 = vld [vmem:[%s4179_s1 + $0x60] sm:$0xff] }
 0x2b5   :  { %2827 = vlog2.f32 %v1333_v50  ;;  %v1338_v53 = vmul.f32 0.6931472, %v2824_v52  ;;  %v2826_v59 = vpop.eup %2825 }
 0x2b6   :  { %2829 = vlog2.f32 %v1334_v51  ;;  %v1336_v4 = vmul.f32 0.6931472, %v2826_v59 }
 0x2b7   :  { %v3699_v58 = vsel %vm1316_vm12, %v1312_v22, %v1338_v53  ;;  %vm4301_vm12 = vmmov %vm4300_vm13 }
 0x2b8   :  { %1745 = vrot.lane.b32.xlu0 %v3699_v58, %s2947_s27  ;;  %1535 = vrot.lane.b32.xlu2 %v3699_v58, %s2944_s24  ;;  %v1343_v7 = vsel %vm1315_vm4, %v1311_v8, %v1336_v4 }
 0x2b9   :  { %1351 = vrot.lane.b32.xlu1 %v3699_v58, %s2945_s25 }
 0x2bb   :  { %v2828_v61 = vpop.eup %2827 }
 0x2bc   :  { %v2830_v0 = vpop.eup %2829  ;;  %v1340_v2 = vmul.f32 0.6931472, %v2828_v61 }
 0x2bd   :  { %v1342_v1 = vmul.f32 0.6931472, %v2830_v0 }
 0x2be   :  { %v1345_v3 = vsel %vm1317_vm8, %v1313_v28, %v1340_v2  ;;  %vm4302_vm8 = vmmov %vm4301_vm12 }
 0x2bf   :  { %v1346_v5 = vsel %vm1318_vm15, %v1314_v25, %v1342_v1  ;;  %vm4303_vm15 = vmmov %vm4302_vm8 }
 0x2c0   :  { %1353 = vrot.lane.b32.xlu2 %v1345_v3, %s2945_s25  ;;  %1355 = vrot.lane.b32.xlu0 %v1346_v5, %s2945_s25 }
 0x2c1   :  { %1349 = vrot.lane.b32.xlu1 %v1343_v7, %s2945_s25 }
 0x2c8   :  { %1640 = vrot.lane.b32.xlu2 %v3699_v58, %s2946_s26  ;;  %1537 = vrot.lane.b32.xlu0 %v1345_v3, %s2944_s24 }
 0x2c9   :  { %1533 = vrot.lane.b32.xlu1 %v1343_v7, %s2944_s24 }
 0x2d0   :  { %1642 = vrot.lane.b32.xlu0 %v1345_v3, %s2946_s26  ;;  %1638 = vrot.lane.b32.xlu2 %v1343_v7, %s2946_s26 }
 0x2d1   :  { %1539 = vrot.lane.b32.xlu1 %v1346_v5, %s2944_s24 }
 0x2d8   :  { %1743 = vrot.lane.b32.xlu0 %v1343_v7, %s2947_s27  ;;  %1644 = vrot.lane.b32.xlu2 %v1346_v5, %s2946_s26 }
 0x2d9   :  { %1848 = vrot.lane.b32.xlu1 %v1343_v7, %s2948_s28 }
 0x2e0   :  { %1749 = vrot.lane.b32.xlu0 %v1346_v5, %s2947_s27  ;;  %1953 = vrot.lane.b32.xlu2 %v1343_v7, %s2949_s29 }
 0x2e1   :  { %1747 = vrot.lane.b32.xlu1 %v1345_v3, %s2947_s27 }
 0x2e8   :  { %1959 = vrot.lane.b32.xlu0 %v1346_v5, %s2949_s29  ;;  %1854 = vrot.lane.b32.xlu2 %v1346_v5, %s2948_s28 }
 0x2e9   :  { %1852 = vrot.lane.b32.xlu1 %v1345_v3, %s2948_s28 }
 0x2f0   :  { %2062 = vrot.lane.b32.xlu0 %v1345_v3, %s2950_s30  ;;  %1957 = vrot.lane.b32.xlu2 %v1345_v3, %s2949_s29 }
 0x2f1   :  { %1850 = vrot.lane.b32.xlu1 %v3699_v58, %s2948_s28 }
 0x2f8   :  { %2058 = vrot.lane.b32.xlu0 %v1343_v7, %s2950_s30  ;;  %1955 = vrot.lane.b32.xlu2 %v3699_v58, %s2949_s29 }
 0x2f9   :  { %2064 = vrot.lane.b32.xlu1 %v1346_v5, %s2950_s30 }
 0x300   :  { %2060 = vrot.lane.b32.xlu0 %v3699_v58, %s2950_s30  ;;  %2169 = vrot.lane.b32.xlu2 %v1346_v5, %s2951_s7 }
 0x301   :  { %2167 = vrot.lane.b32.xlu1 %v1345_v3, %s2951_s7 }
 0x308   :  { %2521 = vperm.xlu0 %2812, %v2628_v17   ;;  %2165 = vrot.lane.b32.xlu2 %v3699_v58, %s2951_s7 }
 0x309   :  { %2163 = vrot.lane.b32.xlu1 %v1343_v7, %s2951_s7 }
 0x312   :  { %v1536_v37 = vpop.permute.xlu2 %1535 }
 0x31a   :  { %v1354_v16 = vpop.permute.xlu2 %1353 }
 0x322   :  { %v1641_v62 = vpop.permute.xlu2 %1640 }
 0x32a   :  { %v3744_v8 = vpop.permute.xlu0 %1745  ;;  %v1639_v63 = vpop.permute.xlu2 %1638 }
 0x32b   :  { %v1352_v21 = vpop.permute.xlu1 %1351 }
 0x32c   :  { %v1358_v22 = vsel %vm4300_vm13, %v1352_v21, %v1354_v16 }
 0x32d   :  { %2719 = vmatpush.msk.msrb.mxu2 %vm3406_vm0, %v1358_v22  ;;  %vm4304_vm0 = vmmov %vm4299_vm11 }
 0x32e   :  { %2720 = vmatmul.msk.f32.vlgmr.msrb.gmra.mxu2 %vm4299_vm11, %v2714_v43  ;;  %vm4305_vm4 = vmmov %vm4304_vm0  ;;  %vm4310_vm11 = vcmp.ge.s32.totalorder %v3375_v29, 1 }
 0x32f   :  { %1508 = vmatpush.msra.mxu2 %v1345_v3  ;;  %vm4306_vm13 = vmmov %vm4304_vm0 }
 0x332   :  { %v1356_v9 = vpop.permute.xlu0 %1355  ;;  %v1645_v46 = vpop.permute.xlu2 %1644 }
 0x333   :  { %v1357_v18 = vsel %vm4301_vm12, %v1354_v16, %v1356_v9  ;;  %v1350_v26 = vpop.permute.xlu1 %1349  ;;  %vm4311_vm12 = vcmp.ge.s32.totalorder %v3335_v14, 1 }
 0x334   :  { %v1359_v57 = vsel %vm4302_vm8, %v1350_v26, %v1352_v21  ;;  %v1360_v54 = vsel %vm4303_vm15, %v1356_v9, %v1350_v26  ;;  %2721 = vmatpush.msk.msrb.mxu3 %vm3414_vm1, %v1357_v18  ;;  %vm4307_vm1 = vmmov %vm4304_vm0  ;;  %vm4312_vm8 = vcmp.lt.s32.totalorder %v3314_v6, 15  ;;  %v2772_v21 = vld [vmem:[%s4179_s1 + $0x80] sm:$0xff] }
 0x335   :  { %2715 = vmatpush.msk.msrb.mxu0 %vm3331_vm7, %v1360_v54  ;;  %2717 = vmatpush.msk.msrb.mxu1 %vm3354_vm10, %v1359_v57  ;;  %vm4308_vm7 = vcmp.lt.s32.totalorder %v3314_v6, 16  ;;  %v1648_v24 = vsel %vm4312_vm8, %v1639_v63, %v1641_v62  ;;  %vm4313_vm15 = vmmov %vm4304_vm0  ;;  %v4378_v57 = vld [vmem:[#allocation7_spill] sm:$0xff]  ;;  %v2781_v54 = vld [vmem:[%s4179_s1 + $0x88] sm:$0xff] }
 0x336   :  { %2716 = vmatmul.msk.f32.vlgmr.msrb.gmra.mxu0 %vm4304_vm0, %v2714_v43  ;;  %2718 = vmatmul.msk.f32.vlgmr.msrb.gmra.mxu1 %vm4305_vm4, %v2714_v43  ;;  %vm4309_vm10 = vmmov %vm4308_vm7  ;;  %v2905_v26 = vld [vmem:[%s4182_s4 + $0x80] sm:$0xff] }
 0x337   :  { %2722 = vmatmul.msk.f32.vlgmr.msrb.gmra.mxu3 %vm4306_vm13, %v2714_v43  ;;  %1468 = vmatpush.msra.mxu0 %v1343_v7  ;;  %vm4314_vm4 = vmmov %vm4304_vm0 }
 0x338   :  { %1488 = vmatpush.msra.mxu1 %v3699_v58  ;;  %2725 = vmatmul.msk.f32.vlgmr.msra.gmra.mxu2 %vm4307_vm1, %v2713_v39  ;;  %vm4315_vm13 = vmmov %vm4304_vm0 }
 0x339   :  { %1528 = vmatpush.msra.mxu3 %v1346_v5  ;;  %vm4316_vm1 = vmmov %vm4312_vm8 }
 0x33a   :  { %v1538_v13 = vpop.permute.xlu0 %1537  ;;  %v3793_v28 = vpop.permute.xlu2 %1953  ;;  %vm4321_vm8 = vmmov %vm4316_vm1 }
 0x33b   :  { %v1542_v19 = vsel %vm4308_vm7, %v1536_v37, %v1538_v13  ;;  %v1534_v40 = vpop.permute.xlu1 %1533  ;;  %v1649_v41 = vsel %vm4321_vm8, %v1645_v46, %v1639_v63 }
 0x33c   :  { %v1543_v55 = vsel %vm4309_vm10, %v1534_v40, %v1536_v37  ;;  %2732 = vmatpush.msk.msrb.mxu2 %vm4310_vm11, %v1542_v19  ;;  %vm4317_vm10 = vmmov %vm4308_vm7  ;;  %vm4319_vm11 = vcmp.ge.s32.totalorder %v3320_v10, 1  ;;  %v2853_v19 = vld [vmem:[%s4182_s4 + $0x168] sm:$0xff] }
 0x33d   :  { %2730 = vmatpush.msk.msrb.mxu1 %vm4311_vm12, %v1543_v55  ;;  %vm4320_vm12 = vcmp.ge.s32.totalorder %v3379_v33, 1 }
 0x33e   :  { %2723 = vmatmul.msk.f32.vlgmr.msra.gmra.mxu0 %vm4313_vm15, %v2713_v39  ;;  %2724 = vmatmul.msk.f32.vlgmr.msra.gmra.mxu1 %vm4304_vm0, %v2713_v39  ;;  %vm4322_vm15 = vmmov %vm4304_vm0 }
 0x33f   :  { %2726 = vmatmul.msk.f32.vlgmr.msra.gmra.mxu3 %vm4314_vm4, %v2713_v39  ;;  %2739 = vmatpush.msk.msra.mxu1 %vm3447_vm5, %v1648_v24  ;;  %vm4318_vm5 = vmmov %vm4316_vm1  ;;  %v2851_v39 = vld [vmem:[%s4182_s4 + $0x170] sm:$0xff] }
 0x340   :  { %2733 = vmatmul.msk.f32.vlgmr.msrb.gmra.mxu2 %vm4315_vm13, %v2727_v20  ;;  %vm4324_vm4 = vmmov %vm4304_vm0  ;;  %vm4325_vm13 = vnez %v4238_v60 }
 0x342   :  { %v1643_v12 = vpop.permute.xlu0 %1642  ;;  %v1855_v38 = vpop.permute.xlu2 %1854 }
 0x343   :  { %v1647_v25 = vsel %vm4316_vm1, %v1641_v62, %v1643_v12  ;;  %v1540_v27 = vpop.permute.xlu1 %1539  ;;  %v1646_v47 = vsel %vm4318_vm5, %v1643_v12, %v1645_v46  ;;  %vm4326_vm1 = vcmp.lt.s32.totalorder %v3314_v6, 1  ;;  %vm4329_vm5 = vmmov %vm4304_vm0  ;;  %v2852_v46 = vld [vmem:[%s4182_s4 + $0xf0] sm:$0xff]  ;;  %v2855_v12 = vld [vmem:[%s4182_s4 + $0x78] sm:$0xff] }
 0x344   :  { %v1541_v31 = vsel %vm4308_vm7, %v1538_v13, %v1540_v27  ;;  %v1544_v35 = vsel %vm4317_vm10, %v1540_v27, %v1534_v40  ;;  %2741 = vmatpush.msk.msra.mxu2 %vm3479_vm2, %v1647_v25  ;;  %vm4323_vm2 = vmmov %vm4304_vm0  ;;  %vm4327_vm7 = vcmp.ge.s32.totalorder %v3337_v15, 1  ;;  %v2854_v40 = vld [vmem:[%s4182_s4 + $0xe8] sm:$0xff]  ;;  %v2857_v25 = vld [vmem:[%s4182_s4 + $0xe0] sm:$0xff] }
 0x345   :  { %2728 = vmatpush.msk.msrb.mxu0 %vm4319_vm11, %v1544_v35  ;;  %2734 = vmatpush.msk.msrb.mxu3 %vm4320_vm12, %v1541_v31  ;;  %vm4328_vm10 = vmmov %vm4304_vm0  ;;  %v2858_v27 = vld [vmem:[%s4182_s4 + $0x70] sm:$0xff]  ;;  %v2859_v31 = vld [vmem:[%s4182_s4 + $0x1f8] sm:$0xff] }
 0x346   :  { %2729 = vmatmul.msk.f32.vlgmr.msrb.gmra.mxu0 %vm4322_vm15, %v2727_v20  ;;  %2731 = vmatmul.msk.f32.vlgmr.msrb.gmra.mxu1 %vm4304_vm0, %v2727_v20  ;;  %vm4331_vm11 = vmmov %vm4326_vm1  ;;  %vm4334_vm15 = vcmp.ge.s32.totalorder %v3322_v11, 1  ;;  %v2860_v35 = vld [vmem:[%s4182_s4 + $0x158] sm:$0xff] }
 0x347   :  { %2735 = vmatmul.msk.f32.vlgmr.msrb.gmra.mxu3 %vm4323_vm2, %v2727_v20  ;;  %2737 = vmatpush.msk.msra.mxu0 %vm3439_vm6, %v1649_v41  ;;  %vm4330_vm6 = vmmov %vm4304_vm0  ;;  %vm4335_vm0 = vcmp.ge.s32.totalorder %v3377_v30, 1  ;;  %vm4336_vm2 = vcmp.ge.s32.totalorder %v3381_v34, 1  ;;  %v2863_v41 = vld [vmem:[%s4182_s4 + $0x1f0] sm:$0xff] }
 0x348   :  { %2742 = vmatmul.msk.f32.vlgmr.msra.gmra.mxu2 %vm4324_vm4, %v2736_v36  ;;  %2743 = vmatpush.msk.msra.mxu3 %vm4325_vm13, %v1646_v47  ;;  %vm4332_vm12 = vmmov %vm4326_vm1  ;;  %v2861_v47 = vld [vmem:[%s4182_s4 + $0xd8] sm:$0xff] }
 0x349   :  { %vm4333_vm8 = vmmov %vm4326_vm1 }
 0x34a   :  { %v1744_v56 = vpop.permute.xlu0 %1743  ;;  %v1958_v52 = vpop.permute.xlu2 %1957  ;;  %vm4337_vm13 = vmmov %vm4324_vm4 }
 0x34b   :  { %v1753_v42 = vsel %vm4326_vm1, %v1744_v56, %v3744_v8  ;;  %v1849_v44 = vpop.permute.xlu1 %1848  ;;  %vm4338_vm1 = vcmp.lt.s32.totalorder %v3314_v6, 127 }
 0x34c   :  { %2748 = vmatpush.msk.msrb.mxu1 %vm4327_vm7, %v1753_v42  ;;  %v1859_v53 = vsel %vm4338_vm1, %v1855_v38, %v1849_v44  ;;  %vm4339_vm7 = vmmov %vm4324_vm4  ;;  %v2866_v42 = vld [vmem:[%s4182_s4 + $0x60] sm:$0xff] }
 0x34e   :  { %2738 = vmatmul.msk.f32.vlgmr.msra.gmra.mxu0 %vm4328_vm10, %v2736_v36  ;;  %2740 = vmatmul.msk.f32.vlgmr.msra.gmra.mxu1 %vm4329_vm5, %v2736_v36  ;;  %vm4340_vm10 = vmmov %vm4324_vm4  ;;  %vm4341_vm5 = vcmp.lt.s32.totalorder %v3381_v34, 15  ;;  %v2754_v34 = vld [vmem:[%s4179_s1 + $0x70] sm:$0xff] }
 0x34f   :  { %2744 = vmatmul.msk.f32.vlgmr.msra.gmra.mxu3 %vm4330_vm6, %v2736_v36  ;;  %vm4342_vm6 = vcmp.lt.s32.totalorder %v3314_v6, 113  ;;  %v2862_v36 = vld [vmem:[%s4182_s4 + $0x68] sm:$0xff] }
 0x352   :  { %v1750_v45 = vpop.permute.xlu0 %1749  ;;  %v1956_v4 = vpop.permute.xlu2 %1955 }
 0x353   :  { %v1754_v60 = vsel %vm4331_vm11, %v1750_v45, %v1744_v56  ;;  %v1748_v48 = vpop.permute.xlu1 %1747  ;;  %vm4343_vm11 = vmmov %vm4342_vm6  ;;  %v2864_v56 = vld [vmem:[%s4182_s4 + $0x150] sm:$0xff] }
 0x354   :  { %v1751_v50 = vsel %vm4332_vm12, %v1748_v48, %v1750_v45  ;;  %v1752_v51 = vsel %vm4333_vm8, %v3744_v8, %v1748_v48  ;;  %2746 = vmatpush.msk.msrb.mxu0 %vm4334_vm15, %v1754_v60  ;;  %vm4344_vm12 = vmmov %vm4338_vm1  ;;  %vm4345_vm8 = vnez %v4251_v23  ;;  %vm4346_vm15 = vcmp.lt.s32.totalorder %v3377_v30, 15  ;;  %v2763_v30 = vld [vmem:[%s4179_s1 + $0x78] sm:$0xff]  ;;  %v2868_v45 = vld [vmem:[%s4182_s4 + $0x148] sm:$0xff] }
 0x355   :  { %2750 = vmatpush.msk.msrb.mxu2 %vm4335_vm0, %v1752_v51  ;;  %2752 = vmatpush.msk.msrb.mxu3 %vm4336_vm2, %v1751_v50  ;;  %vm4347_vm0 = vnez %v4262_v32  ;;  %vm4348_vm2 = vmmov %vm4324_vm4  ;;  %v2869_v60 = vld [vmem:[%s4182_s4 + $0xc8] sm:$0xff]  ;;  %v2870_v48 = vld [vmem:[%s4182_s4 + $0x58] sm:$0xff] }
 0x356   :  { %2747 = vmatmul.msk.f32.vlgmr.msrb.gmra.mxu0 %vm4324_vm4, %v2745_v49  ;;  %2749 = vmatmul.msk.f32.vlgmr.msrb.gmra.mxu1 %vm4337_vm13, %v2745_v49  ;;  %vm4349_vm4 = vmmov %vm4348_vm2  ;;  %v2872_v50 = vld [vmem:[%s4182_s4 + $0x140] sm:$0xff] }
 0x357   :  { %2751 = vmatmul.msk.f32.vlgmr.msrb.gmra.mxu2 %vm4339_vm7, %v2745_v49  ;;  %2753 = vmatmul.msk.f32.vlgmr.msrb.gmra.mxu3 %vm4340_vm10, %v2745_v49  ;;  %vm4350_vm13 = vmmov %vm4338_vm1  ;;  %vm4351_vm7 = vcmp.lt.s32.totalorder %v3322_v11, 15  ;;  %vm4352_vm10 = vcmp.lt.s32.totalorder %v3337_v15, 15  ;;  %v4357_v11 = vld [vmem:[#allocation5_spill] sm:$0xff]  ;;  %v4359_v15 = vld [vmem:[#allocation6_spill] sm:$0xff] }
 0x358   :  { %2761 = vmatpush.msk.msra.mxu3 %vm4341_vm5, %v1859_v53  ;;  %vm4353_vm5 = vmmov %vm4342_vm6  ;;  %v2871_v49 = vld [vmem:[%s4182_s4 + $0x1e0] sm:$0xff]  ;;  %v2875_v53 = vld [vmem:[%s4182_s4 + $0x1d8] sm:$0xff] }
 0x359   :  { %v1962_v32 = vsel %vm4353_vm5, %v1956_v4, %v1958_v52  ;;  %v2873_v51 = vld [vmem:[%s4182_s4 + $0xc0] sm:$0xff] }
 0x35a   :  { %v1960_v58 = vpop.permute.xlu0 %1959  ;;  %v2170_v17 = vpop.permute.xlu2 %2169 }
 0x35b   :  { %v1961_v59 = vsel %vm4342_vm6, %v1958_v52, %v1960_v58  ;;  %v1964_v61 = vsel %vm4343_vm11, %v1960_v58, %v3793_v28  ;;  %v1853_v0 = vpop.permute.xlu1 %1852  ;;  %vm4354_vm6 = vmmov %vm4353_vm5  ;;  %v2874_v52 = vld [vmem:[%s4182_s4 + $0x50] sm:$0xff]  ;;  %v2876_v58 = vld [vmem:[%s4182_s4 + $0x138] sm:$0xff] }
 0x35c   :  { %v1856_v2 = vsel %vm4344_vm12, %v1853_v0, %v1855_v38  ;;  %2770 = vmatpush.msk.msrb.mxu3 %vm4345_vm8, %v1964_v61  ;;  %v1963_v7 = vsel %vm4354_vm6, %v3793_v28, %v1956_v4  ;;  %vm4355_vm11 = vmmov %vm4348_vm2  ;;  %vm4358_vm8 = vnez %v4357_v11  ;;  %v2865_v38 = vld [vmem:[%s4182_s4 + $0xd0] sm:$0xff]  ;;  %v2878_v61 = vld [vmem:[%s4182_s4 + $0x48] sm:$0xff] }
 0x35d   :  { %2759 = vmatpush.msk.msra.mxu2 %vm4346_vm15, %v1856_v2  ;;  %vm4356_vm12 = vmmov %vm4348_vm2  ;;  %vm4360_vm15 = vnez %v4359_v15  ;;  %v2880_v2 = vld [vmem:[%s4182_s4 + $0x130] sm:$0xff]  ;;  %v2882_v4 = vld [vmem:[%s4182_s4 + $0x40] sm:$0xff] }
 0x35e   :  { %v2890_v11 = vld [vmem:[%s4182_s4 + $0x30] sm:$0xff]  ;;  %v2891_v15 = vld [vmem:[%s4182_s4 + $0x1b8] sm:$0xff] }
 0x35f   :  { %2768 = vmatpush.msk.msrb.mxu2 %vm4347_vm0, %v1961_v59  ;;  %2762 = vmatmul.msk.f32.vlgmr.msra.gmra.mxu3 %vm4349_vm4, %v2754_v34  ;;  %vm4361_vm0 = vmmov %vm4348_vm2  ;;  %vm4363_vm4 = vcmp.lt.s32.totalorder %v3314_v6, 112  ;;  %v2877_v59 = vld [vmem:[%s4182_s4 + $0xb8] sm:$0xff] }
 0x360   :  { %2760 = vmatmul.msk.f32.vlgmr.msra.gmra.mxu2 %vm4348_vm2, %v2754_v34  ;;  %vm4362_vm2 = vmmov %vm4361_vm0 }
 0x361   :  { %vm4368_vm5 = vmmov %vm4361_vm0 }
 0x362   :  { %v2063_v1 = vpop.permute.xlu0 %2062  ;;  %vm4369_vm6 = vmmov %vm4361_vm0  ;;  %v2166_v22 = vpop.permute.xlu2 %2165 }
 0x363   :  { %v1851_v3 = vpop.permute.xlu1 %1850 }
 0x364   :  { %v1857_v23 = vsel %vm4350_vm13, %v1851_v3, %v1853_v0  ;;  %v1858_v5 = vsel %vm4338_vm1, %v1849_v44, %v1851_v3  ;;  %vm4364_vm13 = vmmov %vm4363_vm4  ;;  %vm4365_vm1 = vcmp.lt.s32.totalorder %v3375_v29, 15  ;;  %v2867_v44 = vld [vmem:[%s4182_s4 + $0x1e8] sm:$0xff]  ;;  %v2879_v0 = vld [vmem:[%s4182_s4 + $0x1d0] sm:$0xff] }
 0x365   :  { %2755 = vmatpush.msk.msra.mxu0 %vm4351_vm7, %v1858_v5  ;;  %2757 = vmatpush.msk.msra.mxu1 %vm4352_vm10, %v1857_v23  ;;  %vm4366_vm7 = vcmp.lt.s32.totalorder %v3379_v33, 15  ;;  %vm4367_vm10 = vmmov %vm4361_vm0  ;;  %v2884_v3 = vld [vmem:[%s4182_s4 + $0x128] sm:$0xff]  ;;  %v2886_v5 = vld [vmem:[%s4182_s4 + $0x38] sm:$0xff] }
 0x366   :  { %2756 = vmatmul.msk.f32.vlgmr.msra.gmra.mxu0 %vm4355_vm11, %v2754_v34  ;;  %2758 = vmatmul.msk.f32.vlgmr.msra.gmra.mxu1 %vm4356_vm12, %v2754_v34  ;;  %vm4370_vm11 = vmmov %vm4361_vm0  ;;  %v2881_v34 = vld [vmem:[%s4182_s4 + $0xb0] sm:$0xff]  ;;  %v2885_v23 = vld [vmem:[%s4182_s4 + $0xa8] sm:$0xff] }
 0x367   :  { %2764 = vmatpush.msk.msrb.mxu0 %vm4358_vm8, %v1963_v7  ;;  %2766 = vmatpush.msk.msrb.mxu1 %vm4360_vm15, %v1962_v32  ;;  %vm4371_vm12 = vmmov %vm4363_vm4  ;;  %vm4373_vm15 = vcmp.lt.s32.totalorder %v3314_v6, 111  ;;  %v2856_v6 = vld [vmem:[%s4182_s4 + $0x160] sm:$0xff] }
 0x368   :  { %2769 = vmatmul.msk.f32.vlgmr.msrb.gmra.mxu2 %vm4361_vm0, %v2763_v30  ;;  %2771 = vmatmul.msk.f32.vlgmr.msrb.gmra.mxu3 %vm4362_vm2, %v2763_v30  ;;  %vm4372_vm8 = vmmov %vm4363_vm4  ;;  %vm4375_vm2 = vcmp.lt.s32.totalorder %v3320_v10, 15  ;;  %v2849_v10 = vld [vmem:[%s4182_s4 + $0x178] sm:$0xff]  ;;  %v2888_v32 = vld [vmem:[%s4182_s4 + $0x120] sm:$0xff] }
 0x369   :  { %vm4374_vm0 = vmmov %vm4373_vm15  ;;  %v2889_v7 = vld [vmem:[%s4182_s4 + $0xa0] sm:$0xff] }
 0x36a   :  { %v2059_v37 = vpop.permute.xlu0 %2058 }
 0x36b   :  { %v2065_v16 = vpop.permute.xlu1 %2064 }
 0x36c   :  { %v2066_v62 = vsel %vm4363_vm4, %v2063_v1, %v2065_v16  ;;  %v2069_v8 = vsel %vm4364_vm13, %v2065_v16, %v2059_v37  ;;  %vm4376_vm4 = vcmp.lt.s32.totalorder %v3335_v14, 15  ;;  %vm4379_vm13 = vnez %v4378_v57  ;;  %v2850_v14 = vld [vmem:[%s4182_s4 + $0xf8] sm:$0xff]  ;;  %v2894_v16 = vld [vmem:[%s4182_s4 + $0x28] sm:$0xff]  ;;  %v2906_v57 = vld [vmem:[%s4182_s4 + $0x10] sm:$0xff] }
 0x36d   :  { %2777 = vmatpush.msk.msra.mxu2 %vm4365_vm1, %v2066_v62  ;;  %2779 = vmatpush.msk.msra.mxu3 %vm4366_vm7, %v2069_v8  ;;  %vm4380_vm1 = vmmov %vm4368_vm5  ;;  %v2895_v62 = vld [vmem:[%s4182_s4 + $0x1b0] sm:$0xff] }
 0x36e   :  { %2765 = vmatmul.msk.f32.vlgmr.msrb.gmra.mxu0 %vm4367_vm10, %v2763_v30  ;;  %2767 = vmatmul.msk.f32.vlgmr.msrb.gmra.mxu1 %vm4368_vm5, %v2763_v30  ;;  %vm4381_vm7 = vmmov %vm4380_vm1  ;;  %v2887_v30 = vld [vmem:[%s4182_s4 + $0x1c0] sm:$0xff]  ;;  %v2896_v8 = vld [vmem:[%s4182_s4 + $0x110] sm:$0xff] }
 0x36f   :  { %vm4383_vm10 = vmmov %vm4374_vm0 }
 0x370   :  { %2778 = vmatmul.msk.f32.vlgmr.msra.gmra.mxu2 %vm4369_vm6, %v2772_v21  ;;  %2780 = vmatmul.msk.f32.vlgmr.msra.gmra.mxu3 %vm4370_vm11, %v2772_v21  ;;  %vm4384_vm5 = vmmov %vm4374_vm0 }
 0x371   :  { %vm4387_vm6 = vmmov %vm4380_vm1 }
 0x372   :  { %v2061_v43 = vpop.permute.xlu0 %2060  ;;  %vm4388_vm11 = vmmov %vm4380_vm1 }
 0x373   :  { %v2067_v29 = vsel %vm4371_vm12, %v2061_v43, %v2063_v1  ;;  %v2068_v33 = vsel %vm4372_vm8, %v2059_v37, %v2061_v43  ;;  %v2168_v63 = vpop.permute.xlu1 %2167  ;;  %vm4389_vm12 = vmmov %vm4380_vm1  ;;  %v2883_v1 = vld [vmem:[%s4182_s4 + $0x1c8] sm:$0xff]  ;;  %v2893_v37 = vld [vmem:[%s4182_s4 + $0x98] sm:$0xff] }
 0x374   :  { %v2171_v9 = vsel %vm4373_vm15, %v2168_v63, %v2170_v17  ;;  %v2172_v18 = vsel %vm4374_vm0, %v2166_v22, %v2168_v63  ;;  %2773 = vmatpush.msk.msra.mxu0 %vm4375_vm2, %v2068_v33  ;;  %2775 = vmatpush.msk.msra.mxu1 %vm4376_vm4, %v2067_v29  ;;  %v2898_v43 = vld [vmem:[%s4182_s4 + $0x20] sm:$0xff]  ;;  %v2900_v29 = vld [vmem:[%s4182_s4 + $0x108] sm:$0xff]  ;;  %v2902_v63 = vld [vmem:[%s4182_s4 + $0x18] sm:$0xff] }
 0x375   :  { %2786 = vmatpush.msk.msrb.mxu2 %vm3672_vm14, %v2171_v9  ;;  %vm4382_vm14 = vmmov %vm4380_vm1  ;;  %v2901_v33 = vld [vmem:[%s4182_s4 + $0x88] sm:$0xff]  ;;  %v2903_v9 = vld [vmem:[%s4182_s4 + $0x1a0] sm:$0xff] }
 0x376   :  { %2784 = vmatpush.msk.msrb.mxu1 %vm4379_vm13, %v2172_v18  ;;  %2774 = vmatmul.msk.f32.vlgmr.msra.gmra.mxu0 %vm4380_vm1, %v2772_v21  ;;  %v2904_v18 = vld [vmem:[%s4182_s4 + $0x100] sm:$0xff]  ;;  %vm4390_vm13 = vmmov %vm4380_vm1 }
 0x377   :  { %2776 = vmatmul.msk.f32.vlgmr.msra.gmra.mxu1 %vm4381_vm7, %v2772_v21  ;;  %2350 = vmatpush.msra.mxu2 %v2849_v10  ;;  %v2897_v21 = vld [vmem:[%s4182_s4 + $0x90] sm:$0xff]  ;;  %v2908_v10 = vld [vmem:[%s4183_s5 + $0x8] sm:$0xff]  ;;  %vm4391_vm7 = vmmov %vm4380_vm1 }
 0x378   :  { %2327 = vmatpush.msra.mxu1 %v2850_v14  ;;  %2787 = vmatmul.msk.f32.vlgmr.msrb.gmra.mxu2 %vm4382_vm14, %v2781_v54  ;;  %v2909_v14 = vld [vmem:[%s4183_s5 + $0x10] sm:$0xff]  ;;  %vm4392_vm14 = vmmov %vm4380_vm1 }
 0x379   :  { %2351 = vmatpush.msra.mxu2 %v2851_v39  ;;  %v2910_v39 = vld [vmem:[%s4182_s4 + $0x8] sm:$0xff] }
 0x37a   :  { %2328 = vmatpush.msra.mxu1 %v2852_v46  ;;  %v2911_v46 = vld [vmem:[%s4182_s4 + $0x190] sm:$0xff] }
 0x37b   :  { %v2164_v13 = vpop.permute.xlu1 %2163  ;;  %2352 = vmatpush.msra.mxu2 %v2853_v19  ;;  %v2913_v19 = vld [vmem:[%s4182_s4 + $0x188] sm:$0xff] }
 0x37c   :  { %2329 = vmatpush.msra.mxu1 %v2854_v40  ;;  %v2173_v55 = vsel %vm4383_vm10, %v2164_v13, %v2166_v22  ;;  %v2174_v20 = vsel %vm4384_vm5, %v2170_v17, %v2164_v13  ;;  %v2892_v17 = vld [vmem:[%s4182_s4 + $0x118] sm:$0xff]  ;;  %v2899_v22 = vld [vmem:[%s4182_s4 + $0x1a8] sm:$0xff]  ;;  %v2912_v13 = vld [vmem:[%s4182_s4] sm:$0xff] }
 0x37d   :  { %2782 = vmatpush.msk.msrb.mxu0 %vm3656_vm9, %v2173_v55  ;;  %2788 = vmatpush.msk.msrb.mxu3 %vm3680_vm3, %v2174_v20  ;;  %v2914_v40 = vld [vmem:[%s4183_s5] sm:$0xff]  ;;  %v2916_v20 = vld [vmem:[%s4183_s5 + $0x18] sm:$0xff]  ;;  %vm4393_vm10 = vmmov %vm4380_vm1 }
 0x37e   :  { %2783 = vmatmul.msk.f32.vlgmr.msrb.gmra.mxu0 %vm4387_vm6, %v2781_v54  ;;  %2789 = vmatmul.msk.f32.vlgmr.msrb.gmra.mxu3 %vm4389_vm12, %v2781_v54  ;;  %v2915_v55 = vld [vmem:[%s4182_s4 + $0x180] sm:$0xff]  ;;  %vm4394_vm5 = vmmov %vm4380_vm1 }
 0x37f   :  { %2785 = vmatmul.msk.f32.vlgmr.msrb.gmra.mxu1 %vm4388_vm11, %v2781_v54  ;;  %2304 = vmatpush.msra.mxu0 %v2855_v12  ;;  %v2907_v54 = vld [vmem:[%s4182_s4 + $0x198] sm:$0xff]  ;;  %vm4395_vm6 = vmmov %vm4380_vm1 }
 0x380   :  { %2353 = vmatpush.msra.mxu2 %v2856_v6  ;;  %2330 = vmatpush.msra.mxu1 %v2857_v25  ;;  %vm4396_vm11 = vmmov %vm4380_vm1 }
 0x381   :  { %2305 = vmatpush.msra.mxu0 %v2858_v27  ;;  %2373 = vmatpush.msra.mxu3 %v2859_v31  ;;  %vm4397_vm12 = vmmov %vm4380_vm1 }
 0x382   :  { %2354 = vmatpush.msra.mxu2 %v2860_v35  ;;  %2331 = vmatpush.msra.mxu1 %v2861_v47 }
 0x383   :  { %2306 = vmatpush.msra.mxu0 %v2862_v36  ;;  %2374 = vmatpush.msra.mxu3 %v2863_v41 }
 0x384   :  { %2355 = vmatpush.msra.mxu2 %v2864_v56  ;;  %2332 = vmatpush.msra.mxu1 %v2865_v38 }
 0x385   :  { %2307 = vmatpush.msra.mxu0 %v2866_v42  ;;  %2375 = vmatpush.msra.mxu3 %v2867_v44 }
 0x386   :  { %2356 = vmatpush.msra.mxu2 %v2868_v45  ;;  %2333 = vmatpush.msra.mxu1 %v2869_v60 }
 0x387   :  { %2308 = vmatpush.msra.mxu0 %v2870_v48  ;;  %2376 = vmatpush.msra.mxu3 %v2871_v49 }
 0x388   :  { %2357 = vmatpush.msra.mxu2 %v2872_v50  ;;  %2334 = vmatpush.msra.mxu1 %v2873_v51 }
 0x389   :  { %2309 = vmatpush.msra.mxu0 %v2874_v52  ;;  %2377 = vmatpush.msra.mxu3 %v2875_v53 }
 0x38a   :  { %2358 = vmatpush.msra.mxu2 %v2876_v58  ;;  %2335 = vmatpush.msra.mxu1 %v2877_v59 }
 0x38b   :  { %2310 = vmatpush.msra.mxu0 %v2878_v61  ;;  %2378 = vmatpush.msra.mxu3 %v2879_v0 }
 0x38c   :  { %2359 = vmatpush.msra.mxu2 %v2880_v2  ;;  %2336 = vmatpush.msra.mxu1 %v2881_v34 }
 0x38d   :  { %2311 = vmatpush.msra.mxu0 %v2882_v4  ;;  %2379 = vmatpush.msra.mxu3 %v2883_v1 }
 0x38e   :  { %2360 = vmatpush.msra.mxu2 %v2884_v3  ;;  %2337 = vmatpush.msra.mxu1 %v2885_v23 }
 0x38f   :  { %2312 = vmatpush.msra.mxu0 %v2886_v5  ;;  %2380 = vmatpush.msra.mxu3 %v2887_v30 }
 0x390   :  { %2361 = vmatpush.msra.mxu2 %v2888_v32  ;;  %2338 = vmatpush.msra.mxu1 %v2889_v7 }
 0x391   :  { %2313 = vmatpush.msra.mxu0 %v2890_v11  ;;  %2381 = vmatpush.msra.mxu3 %v2891_v15 }
 0x392   :  { %2362 = vmatpush.msra.mxu2 %v2892_v17  ;;  %2339 = vmatpush.msra.mxu1 %v2893_v37 }
 0x393   :  { %2314 = vmatpush.msra.mxu0 %v2894_v16  ;;  %2382 = vmatpush.msra.mxu3 %v2895_v62 }
 0x394   :  { %2363 = vmatpush.msra.mxu2 %v2896_v8  ;;  %2340 = vmatpush.msra.mxu1 %v2897_v21 }
 0x395   :  { %2315 = vmatpush.msra.mxu0 %v2898_v43  ;;  %2383 = vmatpush.msra.mxu3 %v2899_v22 }
 0x396   :  { %2364 = vmatpush.msra.mxu2 %v2900_v29  ;;  %2341 = vmatpush.msra.mxu1 %v2901_v33 }
 0x397   :  { %2316 = vmatpush.msra.mxu0 %v2902_v63  ;;  %2384 = vmatpush.msra.mxu3 %v2903_v9 }
 0x398   :  { %2365 = vmatpush.msra.mxu2 %v2904_v18  ;;  %2342 = vmatpush.msra.mxu1 %v2905_v26 }
 0x399   :  { %2317 = vmatpush.msra.mxu0 %v2906_v57  ;;  %2385 = vmatpush.msra.mxu3 %v2907_v54 }
 0x39a   :  { %2456 = vmatpush.msrb.mxu1 %v2908_v10  ;;  %2479 = vmatpush.msrb.mxu2 %v2909_v14 }
 0x39b   :  { %2318 = vmatpush.msra.mxu0 %v2910_v39  ;;  %2386 = vmatpush.msra.mxu3 %v2911_v46 }
 0x39d   :  { %2319 = vmatpush.msra.mxu0 %v2912_v13  ;;  %2387 = vmatpush.msra.mxu3 %v2913_v19 }
 0x39f   :  { %2433 = vmatpush.msrb.mxu0 %v2914_v40  ;;  %2388 = vmatpush.msra.mxu3 %v2915_v55 }
 0x3a1   :  { %2502 = vmatpush.msrb.mxu3 %v2916_v20 }
 0x3b1   :  { %v1427_v12 = vpop.f32.mrf.mxu2 }
 0x3b3   :  { %v1387_v24 = vpop.f32.mrf.mxu0  ;;  %v1407_v28 = vpop.f32.mrf.mxu1 }
 0x3ba   :  { %v1447_v6 = vpop.f32.mrf.mxu3 }
 0x3bb   :  { %v1470_v25 = vpop.f32.mrf.mxu0  ;;  %v1490_v27 = vpop.f32.mrf.mxu1 }
 0x3bc   :  { %v1510_v31 = vpop.f32.mrf.mxu2  ;;  %v1471_v34 = vadd.f32 %v1470_v25, %v1387_v24  ;;  %v1491_v4 = vadd.f32 %v1490_v27, %v1407_v28 }
 0x3bd   :  { %v1511_v61 = vadd.f32 %v1510_v31, %v1427_v12 }
 0x3c2   :  { %v1530_v35 = vpop.f32.mrf.mxu3 }
 0x3c3   :  { %v1571_v47 = vpop.f32.mrf.mxu0  ;;  %v1591_v36 = vpop.f32.mrf.mxu1  ;;  %v1531_v16 = vadd.f32 %v1530_v35, %v1447_v6 }
 0x3c4   :  { %v1611_v41 = vpop.f32.mrf.mxu2  ;;  %v1634_v23 = vadd.f32 %v1571_v47, %v1471_v34  ;;  %v1635_v5 = vadd.f32 %v1591_v36, %v1491_v4 }
 0x3c5   :  { %v1636_v1 = vadd.f32 %v1611_v41, %v1511_v61 }
 0x3ca   :  { %v1631_v56 = vpop.f32.mrf.mxu3 }
 0x3cb   :  { %v1676_v38 = vpop.f32.mrf.mxu0  ;;  %v1696_v42 = vpop.f32.mrf.mxu1  ;;  %v1637_v43 = vadd.f32 %v1631_v56, %v1531_v16 }
 0x3cc   :  { %v1716_v44 = vpop.f32.mrf.mxu2  ;;  %v1739_v32 = vadd.f32 %v1676_v38, %v1634_v23  ;;  %v1740_v7 = vadd.f32 %v1696_v42, %v1635_v5 }
 0x3cd   :  { %v1741_v30 = vadd.f32 %v1716_v44, %v1636_v1 }
 0x3d2   :  { %v1736_v45 = vpop.f32.mrf.mxu3 }
 0x3d3   :  { %v1781_v48 = vpop.f32.mrf.mxu0  ;;  %v1801_v49 = vpop.f32.mrf.mxu1  ;;  %v1742_v63 = vadd.f32 %v1736_v45, %v1637_v43 }
 0x3d4   :  { %v1844_v62 = vadd.f32 %v1781_v48, %v1739_v32  ;;  %v1845_v8 = vadd.f32 %v1801_v49, %v1740_v7 }
 0x3da   :  { %v1821_v60 = vpop.f32.mrf.mxu2  ;;  %v1841_v50 = vpop.f32.mrf.mxu3 }
 0x3db   :  { %v1846_v15 = vadd.f32 %v1821_v60, %v1741_v30  ;;  %v1847_v54 = vadd.f32 %v1841_v50, %v1742_v63 }
 0x3e2   :  { %v1946_v58 = vpop.f32.mrf.mxu3 }
 0x3e3   :  { %v1926_v51 = vpop.f32.mrf.mxu2  ;;  %v1886_v52 = vpop.f32.mrf.mxu0  ;;  %v1952_v40 = vadd.f32 %v1946_v58, %v1847_v54 }
 0x3e4   :  { %v1906_v53 = vpop.f32.mrf.mxu1  ;;  %v1951_v21 = vadd.f32 %v1926_v51, %v1846_v15  ;;  %v1949_v22 = vadd.f32 %v1886_v52, %v1844_v62 }
 0x3e5   :  { %v1950_v29 = vadd.f32 %v1906_v53, %v1845_v8 }
 0x3eb   :  { %v2031_v59 = vpop.f32.mrf.mxu2  ;;  %v1991_v0 = vpop.f32.mrf.mxu0 }
 0x3ec   :  { %v2011_v2 = vpop.f32.mrf.mxu1  ;;  %v2051_v3 = vpop.f32.mrf.mxu3  ;;  %v2056_v33 = vadd.f32 %v2031_v59, %v1951_v21  ;;  %v2054_v9 = vadd.f32 %v1991_v0, %v1949_v22 }
 0x3ed   :  { %v2055_v18 = vadd.f32 %v2011_v2, %v1950_v29  ;;  %v2057_v28 = vadd.f32 %v2051_v3, %v1952_v40 }
 0x3f3   :  { %v2136_v11 = vpop.f32.mrf.mxu2  ;;  %v2096_v17 = vpop.f32.mrf.mxu0 }
 0x3f4   :  { %v2116_v37 = vpop.f32.mrf.mxu1  ;;  %v2161_v26 = vadd.f32 %v2136_v11, %v2056_v33  ;;  %v2156_v57 = vpop.f32.mrf.mxu3  ;;  %v2159_v10 = vadd.f32 %v2096_v17, %v2054_v9 }
 0x3f5   :  { %v2160_v14 = vadd.f32 %v2116_v37, %v2055_v18  ;;  %v2162_v27 = vadd.f32 %v2156_v57, %v2057_v28 }
 0x3fb   :  { %v2241_v39 = vpop.f32.mrf.mxu2  ;;  %v2201_v13 = vpop.f32.mrf.mxu0 }
 0x3fc   :  { %v2266_v46 = vadd.f32 %v2241_v39, %v2161_v26  ;;  %v2221_v19 = vpop.f32.mrf.mxu1  ;;  %v2264_v55 = vadd.f32 %v2201_v13, %v2159_v10 }
 0x3fd   :  { %v2265_v20 = vadd.f32 %v2221_v19, %v2160_v14 }
 0x3fe   :  { %v2274_v24 = vmin.f32 %v2266_v46, 20.0  ;;  %v2272_v12 = vmin.f32 %v2264_v55, 20.0  ;;  %vm2270_vm9 = vcmp.gt.f32.partialorder %v2266_v46, 20.0  ;;  %vm2268_vm3 = vcmp.gt.f32.partialorder %v2264_v55, 20.0 }
 0x3ff   :  { %v2273_v6 = vmin.f32 %v2265_v20, 20.0  ;;  %vm2269_vm8 = vcmp.gt.f32.partialorder %v2265_v20, 20.0 }
 0x400   :  { %v2280_v25 = vmul.f32 1.442695, %v2274_v24  ;;  %v2276_v31 = vmul.f32 1.442695, %v2272_v12 }
 0x401   :  { %v2278_v35 = vmul.f32 1.442695, %v2273_v6  ;;  %v2261_v47 = vpop.f32.mrf.mxu3 }
 0x402   :  { %2831 = vpow2.f32 %v2280_v25  ;;  %v2267_v36 = vadd.f32 %v2261_v47, %v2162_v27 }
 0x403   :  { %2833 = vpow2.f32 %v2276_v31 }
 0x404   :  { %2835 = vpow2.f32 %v2278_v35  ;;  %v2275_v41 = vmin.f32 %v2267_v36, 20.0  ;;  %vm2271_vm15 = vcmp.gt.f32.partialorder %v2267_v36, 20.0 }
 0x406   :  { %v2282_v56 = vmul.f32 1.442695, %v2275_v41 }
 0x408   :  { %v2832_v38 = vpop.eup %2831  ;;  %2837 = vpow2.f32 %v2282_v56 }
 0x409   :  { %v2834_v42 = vpop.eup %2833  ;;  %v2286_v44 = vadd.f32 1.0, %v2832_v38 }
 0x40a   :  { %v2836_v45 = vpop.eup %2835  ;;  %v2284_v60 = vadd.f32 1.0, %v2834_v42 }
 0x40b   :  { %2839 = vlog2.f32 %v2286_v44  ;;  %v2285_v48 = vadd.f32 1.0, %v2836_v45 }
 0x40c   :  { %2841 = vlog2.f32 %v2284_v60  ;;  %v2522_v60 = vpop.permute.xlu0 %2521 }
 0x40d   :  { %2843 = vlog2.f32 %v2285_v48 }
 0x40e   :  { %v2838_v49 = vpop.eup %2837 }
 0x40f   :  { %v2287_v50 = vadd.f32 1.0, %v2838_v49 }
 0x411   :  { %v2840_v51 = vpop.eup %2839  ;;  %2845 = vlog2.f32 %v2287_v50 }
 0x412   :  { %v2842_v52 = vpop.eup %2841  ;;  %v2293_v53 = vmul.f32 0.6931472, %v2840_v51 }
 0x413   :  { %v2844_v58 = vpop.eup %2843  ;;  %v2289_v59 = vmul.f32 0.6931472, %v2842_v52 }
 0x414   :  { %v4148_v61 = vsel %vm2270_vm9, %v2266_v46, %v2293_v53  ;;  %v2291_v0 = vmul.f32 0.6931472, %v2844_v58  ;;  %vm4398_vm9 = vmmov %vm4380_vm1 }
 0x415   :  { %2366 = vmatmul.f32.vlgmr.msra.gmra.mxu2 %v4148_v61  ;;  %v2296_v2 = vsel %vm2268_vm3, %v2264_v55, %v2289_v59  ;;  %v2302_v3 = vmul.f32 %v4148_v61, %v4148_v61  ;;  %vm4399_vm3 = vmmov %vm4380_vm1 }
 0x416   :  { %2320 = vmatmul.f32.vlgmr.msra.gmra.mxu0 %v2296_v2  ;;  %v2297_v34 = vsel %vm2269_vm8, %v2265_v20, %v2291_v0  ;;  %v2300_v5 = vmul.f32 %v2296_v2, %v2296_v2  ;;  %vm4400_vm8 = vmmov %vm4380_vm1 }
 0x417   :  { %2343 = vmatmul.f32.vlgmr.msra.gmra.mxu1 %v2297_v34  ;;  %v2846_v4 = vpop.eup %2845  ;;  %v2301_v30 = vmul.f32 %v2297_v34, %v2297_v34 }
 0x418   :  { %v2295_v1 = vmul.f32 0.6931472, %v2846_v4 }
 0x41a   :  { %v4153_v23 = vsel %vm2271_vm15, %v2267_v36, %v2295_v1  ;;  %v2518_v36 = vld [vmem:[%s4180_s2] sm:$0xff]  ;;  %s2952_s2 = smov [#allocation2]  }
 0x41b   :  { %2389 = vmatmul.f32.vlgmr.msra.gmra.mxu3 %v4153_v23  ;;  %v2303_v32 = vmul.f32 %v4153_v23, %v4153_v23  ;;  %s2616_s20 = sshll.u32 %s2952_s2, 4  ;;  %s2617_s20 = int_to_ptr.vmem [resolvable:$true] %s2616_s20 }
 0x41d   :  { %2369 = vmatmul.f32.gmra.mxu2 %v2302_v3 }
 0x41e   :  { %2323 = vmatmul.f32.gmra.mxu0 %v2300_v5 }
 0x41f   :  { %2346 = vmatmul.f32.gmra.mxu1 %v2301_v30 }
 0x423   :  { %2392 = vmatmul.f32.gmra.mxu3 %v2303_v32 }
 0x493   :  { %v2321_v7 = vpop.f32.mrf.mxu0 }
 0x494   :  { %v2344_v11 = vpop.f32.mrf.mxu1 }
 0x495   :  { %v2345_v17 = vadd.f32 %v2344_v11, %v2321_v7 }
 0x498   :  { %v2367_v15 = vpop.f32.mrf.mxu2 }
 0x499   :  { %v2368_v16 = vadd.f32 %v2367_v15, %v2345_v17 }
 0x49b   :  { %v2324_v62 = vpop.f32.mrf.mxu0 }
 0x49c   :  { %v2347_v8 = vpop.f32.mrf.mxu1 }
 0x49d   :  { %v2348_v22 = vadd.f32 %v2347_v8, %v2324_v62 }
 0x49e   :  { %v2390_v37 = vpop.f32.mrf.mxu3 }
 0x49f   :  { %v2391_v21 = vadd.f32 %v2390_v37, %v2368_v16 }
 0x4a0   :  { %v2370_v43 = vpop.f32.mrf.mxu2 }
 0x4a1   :  { %v2371_v29 = vadd.f32 %v2370_v43, %v2348_v22  ;;  %v2396_v33 = vmul.f32 0.00390625, %v2391_v21 }
 0x4a3   :  { %v2398_v18 = vmul.f32 %v2396_v33, %v2396_v33 }
 0x4a6   :  { %v2393_v63 = vpop.f32.mrf.mxu3 }
 0x4a7   :  { %v2394_v9 = vadd.f32 %v2393_v63, %v2371_v29 }
 0x4a9   :  { %v2397_v26 = vmul.f32 0.00390625, %v2394_v9 }
 0x4ab   :  { %v2399_v57 = vsub.f32 %v2397_v26, %v2398_v18 }
 0x4ad   :  { %v2400_v54 = vadd.f32 1e-05, %v2399_v57 }
 0x4af   :  { %2847 = vrsqrt.f32 %v2400_v54  ;;  %vm2407_vm2 = vweird.f32 %v2400_v54 }
 0x4b5   :  { %v2848_v10 = vpop.eup %2847 }
 0x4b6   :  { %v2402_v14 = vmul.f32 %v2848_v10, %v2400_v54  ;;  %vm2408_vm0 = vweird.f32 %v2848_v10 }
 0x4b7   :  { %vm2409_vm4 = vmor %vm2407_vm2, %vm2408_vm0 }
 0x4b8   :  { %v2403_v39 = vmul.f32 %v2848_v10, %v2402_v14 }
 0x4ba   :  { %v2404_v46 = vmul.f32 0.5, %v2403_v39 }
 0x4bc   :  { %v2405_v13 = vsub.f32 1.5, %v2404_v46 }
 0x4be   :  { %v2406_v19 = vmul.f32 %v2848_v10, %v2405_v13 }
 0x4c0   :  { %v2410_v40 = vsel %vm2409_vm4, %v2848_v10, %v2406_v19 }
 0x4c1   :  { %v2411_v55 = vmul.f32 %v2410_v40, %v2396_v33 }
 0x4c3   :  { %2790 = vmatmul.msk.f32.vlgmr.msrb.gmra.mxu0 %vm4390_vm13, %v2411_v55  ;;  %2792 = vmatmul.msk.f32.vlgmr.msrb.gmra.mxu1 %vm4380_vm1, %v2411_v55 }
 0x4c4   :  { %2794 = vmatmul.msk.f32.vlgmr.msrb.gmra.mxu2 %vm4391_vm7, %v2411_v55  ;;  %2796 = vmatmul.msk.f32.vlgmr.msrb.gmra.mxu3 %vm4392_vm14, %v2411_v55 }
 0x4cb   :  { %2791 = vmatmul.msk.f32.gmra.mxu0 %vm4393_vm10, %v2410_v40  ;;  %2793 = vmatmul.msk.f32.gmra.mxu1 %vm4394_vm5, %v2410_v40 }
 0x4cc   :  { %2795 = vmatmul.msk.f32.gmra.mxu2 %vm4395_vm6, %v2410_v40  ;;  %2797 = vmatmul.msk.f32.gmra.mxu3 %vm4396_vm11, %v2410_v40 }
 0x540   :  { %v2435_v20 = vpop.f32.mrf.mxu0  ;;  %v2458_v24 = vpop.f32.mrf.mxu1 }
 0x547   :  { %v2481_v28 = vpop.f32.mrf.mxu2  ;;  %v2504_v12 = vpop.f32.mrf.mxu3 }
 0x548   :  { %v2438_v6 = vpop.f32.mrf.mxu0  ;;  %v2461_v25 = vpop.f32.mrf.mxu1 }
 0x549   :  { %v2510_v27 = vmul.f32 %v2438_v6, %v2296_v2  ;;  %v2511_v31 = vmul.f32 %v2461_v25, %v2297_v34 }
 0x54b   :  { %v2514_v35 = vsub.f32 %v2510_v27, %v2435_v20  ;;  %v2515_v47 = vsub.f32 %v2511_v31, %v2458_v24 }
 0x54d   :  { %2542 = vmatpush.msra.mxu0 %v2514_v35  ;;  %2562 = vmatpush.msra.mxu1 %v2515_v47 }
 0x54e   :  { %2798 = vmatmul.msk.f32.vlgmr.msra.gmra.mxu0 %vm4397_vm12, %v2518_v36  ;;  %2799 = vmatmul.msk.f32.vlgmr.msra.gmra.mxu1 %vm4398_vm9, %v2518_v36 }
 0x54f   :  { %v2484_v41 = vpop.f32.mrf.mxu2  ;;  %v2507_v56 = vpop.f32.mrf.mxu3 }
 0x550   :  { %v2512_v38 = vmul.f32 %v2484_v41, %v4148_v61  ;;  %v2513_v42 = vmul.f32 %v2507_v56, %v4153_v23 }
 0x552   :  { %v2516_v44 = vsub.f32 %v2512_v38, %v2481_v28  ;;  %v2517_v45 = vsub.f32 %v2513_v42, %v2504_v12 }
 0x554   :  { %2582 = vmatpush.msra.mxu2 %v2516_v44  ;;  %2602 = vmatpush.msra.mxu3 %v2517_v45 }
 0x555   :  { %2800 = vmatmul.msk.f32.vlgmr.msra.gmra.mxu2 %vm4399_vm3, %v2518_v36  ;;  %2801 = vmatmul.msk.f32.vlgmr.msra.gmra.mxu3 %vm4400_vm8, %v2518_v36 }
 0x5cb   :  { %v2544_v48 = vpop.f32.mrf.mxu0  ;;  %v2564_v49 = vpop.f32.mrf.mxu1 }
 0x5cc   :  { %v2545_v50 = vadd.f32 %v2544_v48, %v2522_v60  ;;  %v2565_v51 = vadd.f32 %v2564_v49, %v2522_v60 }
 0x5ce   :  { %2607 = vst [vmem:[#allocation2] sm:$0xff] %v2545_v50 }
 0x5cf   :  { %2608 = vst [vmem:[#allocation2 + $0x8] sm:$0xff] %v2565_v51 }
 0x5d8   :  { %v2584_v52 = vpop.f32.mrf.mxu2  ;;  %v2604_v53 = vpop.f32.mrf.mxu3 }
 0x5d9   :  { %v2585_v58 = vadd.f32 %v2584_v52, %v2522_v60  ;;  %v2605_v59 = vadd.f32 %v2604_v53, %v2522_v60 }
 0x5db   :  { %2609 = vst [vmem:[#allocation2 + $0x10] sm:$0xff] %v2585_v58 }
 0x5dc   :  { %2610 = vst [vmem:[#allocation2 + $0x18] sm:$0xff] %v2605_v59 }
 0x5dd   :  { %2621 = dma.vmem_to_hbm [thread:$0]  %s2617_s20, 512, %s2619_s23, [#allocation3]  }
 0x5de   :  { %2941 = dma.done.wait [#allocation3], 512  }
 0x5df   :  { %2942 = vsyncadd [#allocation3], 4294966784 }
 0x5e0   :  { %2626 = vsyncpa [#allocation3], 1 }

</bundles_post_ra>
